<compile_context>
chip_gen: v7x
topology: tpu7x:2x2x1
jax: 0.10.0
libtpu: 0.0.40
codegen_flags: <defaults>
</compile_context>

<pallas_src>
import functools

import jax
import jax.numpy as jnp
from jax.experimental import pallas as pl
from jax.experimental.pallas import tpu as pltpu


def _sigmoid(z):
    # Numerically stable logistic: only exponentiates non-positive arguments.
    ez = jnp.exp(-jnp.abs(z))
    return jnp.where(z >= 0, 1.0, ez) / (1.0 + ez)


def _leaky_relu(z, slope=0.01):
    return jnp.where(z >= 0, z, slope * z)


# -----------------------------------------------------------------------------
# Fused kernel: Tt LSTM timesteps (recurrence) + FusionNet head + one_weight.
#   xw_ref  : (Tt, 4, B, H)   precomputed x_t*W_ih + b, split per gate (i,f,g,o)
#   at_ref  : (Tt*B, A)       abs_time rows for this time block (row = tt*B+b)
#   whh_ref : (4, H, H)       per-gate recurrent weights (resident)
#   sc_ref  : (3,) SMEM       [b3, ow_w, ow_b]
#   pred_ref: (Tt*B, 1)       predictions for this time block
# -----------------------------------------------------------------------------
def _spwrnn_fused_kernel(xw_ref, at_ref, whh_ref, w1m_ref, w1a_ref, b1_ref,
                         w2_ref, b2_ref, w3_ref, sc_ref, pred_ref,
                         h_scr, c_scr, hblk_scr):
    Tt = xw_ref.shape[0]
    B, H = h_scr.shape

    @pl.when(pl.program_id(0) == 0)
    def _init():
        h_scr[...] = jnp.zeros_like(h_scr)
        c_scr[...] = jnp.zeros_like(c_scr)

    # Hoisted, loop-invariant per-gate recurrent weights (loaded once).
    w_i, w_f, w_g, w_o = whh_ref[0], whh_ref[1], whh_ref[2], whh_ref[3]

    h = h_scr[...]
    c = c_scr[...]
    # Fully unrolled static loop over the Tt sub-steps of this block: no
    # per-step grid overhead, full scheduler visibility, whole-ref gate ops.
    for tt in range(Tt):
        i_g = _sigmoid(xw_ref[tt, 0]
                       + jnp.dot(h, w_i, preferred_element_type=jnp.float32))
        f_g = _sigmoid(xw_ref[tt, 1]
                       + jnp.dot(h, w_f, preferred_element_type=jnp.float32))
        g_g = jnp.tanh(xw_ref[tt, 2]
                       + jnp.dot(h, w_g, preferred_element_type=jnp.float32))
        o_g = _sigmoid(xw_ref[tt, 3]
                       + jnp.dot(h, w_o, preferred_element_type=jnp.float32))
        c = f_g * c + i_g * g_g
        h = o_g * jnp.tanh(c)
        hblk_scr[tt * B:(tt + 1) * B, :] = h     # row tt*B + b  (static slice)
    h_scr[...] = h
    c_scr[...] = c

    # ---- FusionNet + one_weight head, batched over the Tt*B rows in VMEM ----
    main = hblk_scr[...]                         # (R, H)
    aux = at_ref[...]                            # (R, A)
    # fc1(concat(main, aux)) == main @ W1m + aux @ W1a + b1 (no concat needed)
    f1 = _leaky_relu(
        jnp.dot(main, w1m_ref[...], preferred_element_type=jnp.float32)
        + jnp.dot(aux, w1a_ref[...], preferred_element_type=jnp.float32)
        + b1_ref[...])
    f2 = _leaky_relu(
        jnp.dot(f1, w2_ref[...], preferred_element_type=jnp.float32)
        + b2_ref[...]) + f1                      # residual connection
    f3 = _leaky_relu(
        jnp.dot(f2, w3_ref[...], preferred_element_type=jnp.float32)
        + sc_ref[0])                             # + b3 (scalar from SMEM)
    # one_weight: Linear(1, 1) -> w*x + b (scalars from SMEM)
    pred_ref[...] = (sc_ref[1] * f3 + sc_ref[2]).astype(pred_ref.dtype)


# -----------------------------------------------------------------------------
# Wrapper: full SPWRNN_WO_L.forward
# -----------------------------------------------------------------------------
@functools.partial(jax.jit, static_argnames=("time_tile",))
def spwrnn_wo_l_forward(dec_input, abs_time, params, *, time_tile: int = 8):
    """dec_input: [B, T, 1]; abs_time: [B, T, time_size] -> [B, T, 1]."""
    B, T, _ = dec_input.shape
    H = params["w_hh"].shape[0]
    A = params["w1a"].shape[0]
    M = params["w1m"].shape[1]

    # Time-block size: needs T % Tt == 0 and (Tt*B) % 8 == 0 (sublane rule),
    # otherwise fall back to a single block.  TODO(synk): pad T instead.
    Tt = min(time_tile, T)
    if (T % Tt != 0) or ((Tt * B) % 8 != 0):
        Tt = T
    n_blk = T // Tt
    R = Tt * B

    # Hoist the input/bias contribution off the recurrence; split per gate.
    x = dec_input.astype(jnp.float32)                              # (B, T, 1)
    xw = x * params["w_ih"] + params["b_lstm"]                     # (B, T, 4H)
    xw = jnp.transpose(xw.reshape(B, T, 4, H), (1, 2, 0, 3))       # (T, 4, B, H)

    # Per-gate recurrent weights: (H, 4H) -> (4, H, H), gate order i, f, g, o.
    w_hh_g = jnp.transpose(params["w_hh"].reshape(H, 4, H), (1, 0, 2))

    # abs_time rows flattened time-major: row index = t*B + b.
    at_flat = jnp.transpose(abs_time.astype(jnp.float32),
                            (1, 0, 2)).reshape(T * B, A)

    # Tiny scalars (b3, one_weight w, one_weight b) go to SMEM.
    scalars = jnp.concatenate([params["b3"].reshape(-1),
                               params["ow"].reshape(-1)]).astype(jnp.float32)

    pred_flat = pl.pallas_call(
        _spwrnn_fused_kernel,
        out_shape=jax.ShapeDtypeStruct((T * B, 1), jnp.float32),
        grid=(n_blk,),
        in_specs=[
            pl.BlockSpec((Tt, 4, B, H), lambda tb: (tb, 0, 0, 0)),  # xw
            pl.BlockSpec((R, A), lambda tb: (tb, 0)),               # abs_time
            pl.BlockSpec((4, H, H), lambda tb: (0, 0, 0)),          # W_hh (res)
            pl.BlockSpec((H, M), lambda tb: (0, 0)),                # fc1 main
            pl.BlockSpec((A, M), lambda tb: (0, 0)),                # fc1 aux
            pl.BlockSpec((1, M), lambda tb: (0, 0)),                # b1
            pl.BlockSpec((M, M), lambda tb: (0, 0)),                # fc2
            pl.BlockSpec((1, M), lambda tb: (0, 0)),                # b2
            pl.BlockSpec((M, 1), lambda tb: (0, 0)),                # fc3
            pl.BlockSpec(memory_space=pltpu.MemorySpace.SMEM),      # scalars
        ],
        out_specs=pl.BlockSpec((R, 1), lambda tb: (tb, 0)),
        scratch_shapes=[
            pltpu.VMEM((B, H), jnp.float32),      # h state (carried)
            pltpu.VMEM((B, H), jnp.float32),      # c state (carried)
            pltpu.VMEM((R, H), jnp.float32),      # hidden states of this block
        ],
        compiler_params=pltpu.CompilerParams(
            dimension_semantics=("arbitrary",)),  # recurrence over time blocks
    )(xw, at_flat, w_hh_g, params["w1m"], params["w1a"], params["b1"],
      params["w2"], params["b2"], params["w3"], scalars)

    # rows are (t*B + b)  ->  [B, T, 1]
    return jnp.transpose(pred_flat.reshape(T, B), (1, 0))[..., None]


# -----------------------------------------------------------------------------
# Pure-JAX reference (mirrors the PyTorch forward, incl. per-timestep loops)
# -----------------------------------------------------------------------------
def reference_forward(dec_input, abs_time, params):
    B, T, _ = dec_input.shape
    H = params["w_hh"].shape[0]
    h = jnp.zeros((B, H), jnp.float32)
    c = jnp.zeros((B, H), jnp.float32)
    hs = []
    for t in range(T):
        x_t = dec_input[:, t, :].astype(jnp.float32)               # (B, 1)
        gates = x_t * params["w_ih"] + h @ params["w_hh"] + params["b_lstm"]
        i = _sigmoid(gates[:, 0 * H:1 * H])
        f = _sigmoid(gates[:, 1 * H:2 * H])
        g = jnp.tanh(gates[:, 2 * H:3 * H])
        o = _sigmoid(gates[:, 3 * H:4 * H])
        c = f * c + i * g
        h = o * jnp.tanh(c)
        hs.append(h)
    hist = jnp.stack(hs, axis=1)                                    # (B, T, H)

    preds = []
    for t in range(T):
        main = hist[:, t, :]
        aux = abs_time[:, t, :].astype(jnp.float32)
        f1 = _leaky_relu(main @ params["w1m"] + aux @ params["w1a"] + params["b1"])
        f2 = _leaky_relu(f1 @ params["w2"] + params["b2"]) + f1
        f3 = _leaky_relu(f2 @ params["w3"] + params["b3"])
        preds.append(f3 * params["ow"][0, 0] + params["ow"][0, 1])
    return jnp.concatenate(preds, axis=1)[..., None]                # (B, T, 1)


if __name__ == "__main__":
    key = jax.random.PRNGKey(0)
    B, T = 2, 16           # batch, seq_len (two time blocks of Tt=8)
    H = 32                 # config.hidden_size
    A = 4                  # config.time_size
    M = 32                 # config.medium_features

    ks = jax.random.split(key, 12)
    s = 0.3
    params = {
        # LSTM (input_size=1): W_ih as a (1, 4H) row, W_hh transposed to (H, 4H),
        # b = b_ih + b_hh as (1, 4H).  Gate order i, f, g, o (PyTorch).
        "w_ih":   s * jax.random.normal(ks[0], (1, 4 * H), jnp.float32),
        "w_hh":   s * jax.random.normal(ks[1], (H, 4 * H), jnp.float32),
        "b_lstm": s * jax.random.normal(ks[2], (1, 4 * H), jnp.float32),
        # FusionNet (fc1 split into main / auxiliary halves), weights transposed.
        "w1m": s * jax.random.normal(ks[3], (H, M), jnp.float32),
        "w1a": s * jax.random.normal(ks[4], (A, M), jnp.float32),
        "b1":  s * jax.random.normal(ks[5], (1, M), jnp.float32),
        "w2":  s * jax.random.normal(ks[6], (M, M), jnp.float32),
        "b2":  s * jax.random.normal(ks[7], (1, M), jnp.float32),
        "w3":  s * jax.random.normal(ks[8], (M, 1), jnp.float32),
        "b3":  s * jax.random.normal(ks[9], (1, 1), jnp.float32),
        # one_weight: Linear(1,1) packed as [w, b].
        "ow":  s * jax.random.normal(ks[10], (1, 2), jnp.float32),
    }

    dec_input = jax.random.normal(ks[11], (B, T, 1), jnp.float32)
    abs_time = jax.random.normal(jax.random.PRNGKey(1), (B, T, A), jnp.float32)

    pred = spwrnn_wo_l_forward(dec_input, abs_time, params)
    pred = jax.block_until_ready(pred)

    assert pred.shape == (B, T, 1), pred.shape
    ref = reference_forward(dec_input, abs_time, params)
    assert jnp.allclose(pred, ref, rtol=1e-3, atol=1e-3), (
        "mismatch vs reference forward")

    print("KERNEL_OK")
</pallas_src>

<mosaic_0001>
module attributes {stable_mosaic.version = 11 : i64} {
  func.func @_spwrnn_fused_kernel(%arg0: i32, %arg1: memref<8x4x2x32xf32, #tpu.memory_space<vmem>>, %arg2: memref<16x4xf32, #tpu.memory_space<vmem>>, %arg3: memref<4x32x32xf32, #tpu.memory_space<vmem>>, %arg4: memref<32x32xf32, #tpu.memory_space<vmem>>, %arg5: memref<4x32xf32, #tpu.memory_space<vmem>>, %arg6: memref<1x32xf32, #tpu.memory_space<vmem>>, %arg7: memref<32x32xf32, #tpu.memory_space<vmem>>, %arg8: memref<1x32xf32, #tpu.memory_space<vmem>>, %arg9: memref<32x1xf32, #tpu.memory_space<vmem>>, %arg10: memref<3xf32, #tpu.memory_space<smem>>, %arg11: memref<16x1xf32, #tpu.memory_space<vmem>>, %arg12: memref<2x32xf32, #tpu.memory_space<vmem>>, %arg13: memref<2x32xf32, #tpu.memory_space<vmem>>, %arg14: memref<16x32xf32, #tpu.memory_space<vmem>>) attributes {dimension_semantics = [#tpu.dimension_semantics<arbitrary>], iteration_bounds = array<i64: 2>, scalar_prefetch = 0 : i64, scratch_operands = 3 : i64, tpu.core_type = #tpu.core_type<tc>, window_params = [{transform_indices = @transform_0, window_bounds = array<i64: 8, 4, 2, 32>}, {transform_indices = @transform_1, window_bounds = array<i64: 16, 4>}, {pipeline_mode = #tpu.pipeline_mode<synchronous>, transform_indices = @transform_2, window_bounds = array<i64: 4, 32, 32>}, {pipeline_mode = #tpu.pipeline_mode<synchronous>, transform_indices = @transform_3, window_bounds = array<i64: 32, 32>}, {pipeline_mode = #tpu.pipeline_mode<synchronous>, transform_indices = @transform_4, window_bounds = array<i64: 4, 32>}, {pipeline_mode = #tpu.pipeline_mode<synchronous>, transform_indices = @transform_5, window_bounds = array<i64: 1, 32>}, {pipeline_mode = #tpu.pipeline_mode<synchronous>, transform_indices = @transform_6, window_bounds = array<i64: 32, 32>}, {pipeline_mode = #tpu.pipeline_mode<synchronous>, transform_indices = @transform_7, window_bounds = array<i64: 1, 32>}, {pipeline_mode = #tpu.pipeline_mode<synchronous>, transform_indices = @transform_8, window_bounds = array<i64: 32, 1>}, {transform_indices = @transform_9, window_bounds = array<i64: 3>}, {transform_indices = @transform_10, window_bounds = array<i64: 16, 1>}]} {
    %c0_i32 = arith.constant 0 : i32
    %0 = arith.cmpi eq, %arg0, %c0_i32 : i32
    %1 = arith.extui %0 : i1 to i32
    %c0_i32_0 = arith.constant 0 : i32
    %2 = arith.cmpi ne, %1, %c0_i32_0 : i32
    scf.if %2 {
      %cst_311 = arith.constant 0.000000e+00 : f32
      %506 = vector.broadcast %cst_311 : f32 to vector<2x32xf32>
      %c0_312 = arith.constant 0 : index
      %c0_313 = arith.constant 0 : index
      %507 = vector.load %arg12[%c0_312, %c0_313] : memref<2x32xf32, #tpu.memory_space<vmem>>, vector<2x32xf32>
      tpu.vector_store %arg12[%c0_312, %c0_313], %506 {strides = array<i32>} : memref<2x32xf32, #tpu.memory_space<vmem>>, vector<2x32xf32>,
      %cst_314 = arith.constant 0.000000e+00 : f32
      %508 = vector.broadcast %cst_314 : f32 to vector<2x32xf32>
      %c0_315 = arith.constant 0 : index
      %c0_316 = arith.constant 0 : index
      %509 = vector.load %arg13[%c0_315, %c0_316] : memref<2x32xf32, #tpu.memory_space<vmem>>, vector<2x32xf32>
      tpu.vector_store %arg13[%c0_315, %c0_316], %508 {strides = array<i32>} : memref<2x32xf32, #tpu.memory_space<vmem>>, vector<2x32xf32>,
    } else {
    }
    %c0 = arith.constant 0 : index
    %c0_1 = arith.constant 0 : index
    %c0_2 = arith.constant 0 : index
    %3 = vector.load %arg3[%c0, %c0_1, %c0_2] : memref<4x32x32xf32, #tpu.memory_space<vmem>>, vector<1x32x32xf32>
    %4 = vector.shape_cast %3 : vector<1x32x32xf32> to vector<32x32xf32>
    %c1 = arith.constant 1 : index
    %c0_3 = arith.constant 0 : index
    %c0_4 = arith.constant 0 : index
    %5 = vector.load %arg3[%c1, %c0_3, %c0_4] : memref<4x32x32xf32, #tpu.memory_space<vmem>>, vector<1x32x32xf32>
    %6 = vector.shape_cast %5 : vector<1x32x32xf32> to vector<32x32xf32>
    %c2 = arith.constant 2 : index
    %c0_5 = arith.constant 0 : index
    %c0_6 = arith.constant 0 : index
    %7 = vector.load %arg3[%c2, %c0_5, %c0_6] : memref<4x32x32xf32, #tpu.memory_space<vmem>>, vector<1x32x32xf32>
    %8 = vector.shape_cast %7 : vector<1x32x32xf32> to vector<32x32xf32>
    %c3 = arith.constant 3 : index
    %c0_7 = arith.constant 0 : index
    %c0_8 = arith.constant 0 : index
    %9 = vector.load %arg3[%c3, %c0_7, %c0_8] : memref<4x32x32xf32, #tpu.memory_space<vmem>>, vector<1x32x32xf32>
    %10 = vector.shape_cast %9 : vector<1x32x32xf32> to vector<32x32xf32>
    %c0_9 = arith.constant 0 : index
    %c0_10 = arith.constant 0 : index
    %11 = vector.load %arg12[%c0_9, %c0_10] : memref<2x32xf32, #tpu.memory_space<vmem>>, vector<2x32xf32>
    %c0_11 = arith.constant 0 : index
    %c0_12 = arith.constant 0 : index
    %12 = vector.load %arg13[%c0_11, %c0_12] : memref<2x32xf32, #tpu.memory_space<vmem>>, vector<2x32xf32>
    %c0_13 = arith.constant 0 : index
    %c0_14 = arith.constant 0 : index
    %c0_15 = arith.constant 0 : index
    %c0_16 = arith.constant 0 : index
    %13 = vector.load %arg1[%c0_13, %c0_14, %c0_15, %c0_16] : memref<8x4x2x32xf32, #tpu.memory_space<vmem>>, vector<1x1x2x32xf32>
    %14 = vector.shape_cast %13 : vector<1x1x2x32xf32> to vector<2x32xf32>
    %cst = arith.constant dense<0.000000e+00> : vector<2x32xf32>
    %15 = tpu.matmul %11, %4, %cst {dimension_numbers = #tpu.dot_dimension_numbers<[1], [0], [0], [1], [0, 0, 1, 1], [], []>} : vector<2x32xf32>, vector<32x32xf32>, vector<2x32xf32> -> vector<2x32xf32>
    %16 = arith.addf %14, %15 : vector<2x32xf32>
    %17 = math.absf %16 : vector<2x32xf32>
    %cst_17 = arith.constant 0.000000e+00 : f32
    %18 = vector.broadcast %cst_17 : f32 to vector<2x32xf32>
    %19 = arith.subf %18, %17 : vector<2x32xf32>
    %20 = math.exp %19 : vector<2x32xf32>
    %cst_18 = arith.constant 0.000000e+00 : f32
    %21 = vector.broadcast %cst_18 : f32 to vector<2x32xf32>
    %22 = arith.cmpf oge, %16, %21 : vector<2x32xf32>
    %cst_19 = arith.constant 1.000000e+00 : f32
    %23 = vector.broadcast %cst_19 : f32 to vector<2x32xf32>
    %24 = arith.select %22, %23, %20 : vector<2x32xi1>, vector<2x32xf32>
    %cst_20 = arith.constant 1.000000e+00 : f32
    %25 = vector.broadcast %cst_20 : f32 to vector<2x32xf32>
    %26 = arith.addf %25, %20 : vector<2x32xf32>
    %27 = arith.divf %24, %26 : vector<2x32xf32>
    %c0_21 = arith.constant 0 : index
    %c1_22 = arith.constant 1 : index
    %c0_23 = arith.constant 0 : index
    %c0_24 = arith.constant 0 : index
    %28 = vector.load %arg1[%c0_21, %c1_22, %c0_23, %c0_24] : memref<8x4x2x32xf32, #tpu.memory_space<vmem>>, vector<1x1x2x32xf32>
    %29 = vector.shape_cast %28 : vector<1x1x2x32xf32> to vector<2x32xf32>
    %cst_25 = arith.constant dense<0.000000e+00> : vector<2x32xf32>
    %30 = tpu.matmul %11, %6, %cst_25 {dimension_numbers = #tpu.dot_dimension_numbers<[1], [0], [0], [1], [0, 0, 1, 1], [], []>} : vector<2x32xf32>, vector<32x32xf32>, vector<2x32xf32> -> vector<2x32xf32>
    %31 = arith.addf %29, %30 : vector<2x32xf32>
    %32 = math.absf %31 : vector<2x32xf32>
    %cst_26 = arith.constant 0.000000e+00 : f32
    %33 = vector.broadcast %cst_26 : f32 to vector<2x32xf32>
    %34 = arith.subf %33, %32 : vector<2x32xf32>
    %35 = math.exp %34 : vector<2x32xf32>
    %cst_27 = arith.constant 0.000000e+00 : f32
    %36 = vector.broadcast %cst_27 : f32 to vector<2x32xf32>
    %37 = arith.cmpf oge, %31, %36 : vector<2x32xf32>
    %cst_28 = arith.constant 1.000000e+00 : f32
    %38 = vector.broadcast %cst_28 : f32 to vector<2x32xf32>
    %39 = arith.select %37, %38, %35 : vector<2x32xi1>, vector<2x32xf32>
    %cst_29 = arith.constant 1.000000e+00 : f32
    %40 = vector.broadcast %cst_29 : f32 to vector<2x32xf32>
    %41 = arith.addf %40, %35 : vector<2x32xf32>
    %42 = arith.divf %39, %41 : vector<2x32xf32>
    %c0_30 = arith.constant 0 : index
    %c2_31 = arith.constant 2 : index
    %c0_32 = arith.constant 0 : index
    %c0_33 = arith.constant 0 : index
    %43 = vector.load %arg1[%c0_30, %c2_31, %c0_32, %c0_33] : memref<8x4x2x32xf32, #tpu.memory_space<vmem>>, vector<1x1x2x32xf32>
    %44 = vector.shape_cast %43 : vector<1x1x2x32xf32> to vector<2x32xf32>
    %cst_34 = arith.constant dense<0.000000e+00> : vector<2x32xf32>
    %45 = tpu.matmul %11, %8, %cst_34 {dimension_numbers = #tpu.dot_dimension_numbers<[1], [0], [0], [1], [0, 0, 1, 1], [], []>} : vector<2x32xf32>, vector<32x32xf32>, vector<2x32xf32> -> vector<2x32xf32>
    %46 = arith.addf %44, %45 : vector<2x32xf32>
    %47 = math.tanh %46 : vector<2x32xf32>
    %c0_35 = arith.constant 0 : index
    %c3_36 = arith.constant 3 : index
    %c0_37 = arith.constant 0 : index
    %c0_38 = arith.constant 0 : index
    %48 = vector.load %arg1[%c0_35, %c3_36, %c0_37, %c0_38] : memref<8x4x2x32xf32, #tpu.memory_space<vmem>>, vector<1x1x2x32xf32>
    %49 = vector.shape_cast %48 : vector<1x1x2x32xf32> to vector<2x32xf32>
    %cst_39 = arith.constant dense<0.000000e+00> : vector<2x32xf32>
    %50 = tpu.matmul %11, %10, %cst_39 {dimension_numbers = #tpu.dot_dimension_numbers<[1], [0], [0], [1], [0, 0, 1, 1], [], []>} : vector<2x32xf32>, vector<32x32xf32>, vector<2x32xf32> -> vector<2x32xf32>
    %51 = arith.addf %49, %50 : vector<2x32xf32>
    %52 = math.absf %51 : vector<2x32xf32>
    %cst_40 = arith.constant 0.000000e+00 : f32
    %53 = vector.broadcast %cst_40 : f32 to vector<2x32xf32>
    %54 = arith.subf %53, %52 : vector<2x32xf32>
    %55 = math.exp %54 : vector<2x32xf32>
    %cst_41 = arith.constant 0.000000e+00 : f32
    %56 = vector.broadcast %cst_41 : f32 to vector<2x32xf32>
    %57 = arith.cmpf oge, %51, %56 : vector<2x32xf32>
    %cst_42 = arith.constant 1.000000e+00 : f32
    %58 = vector.broadcast %cst_42 : f32 to vector<2x32xf32>
    %59 = arith.select %57, %58, %55 : vector<2x32xi1>, vector<2x32xf32>
    %cst_43 = arith.constant 1.000000e+00 : f32
    %60 = vector.broadcast %cst_43 : f32 to vector<2x32xf32>
    %61 = arith.addf %60, %55 : vector<2x32xf32>
    %62 = arith.divf %59, %61 : vector<2x32xf32>
    %63 = arith.mulf %42, %12 : vector<2x32xf32>
    %64 = arith.mulf %27, %47 : vector<2x32xf32>
    %65 = arith.addf %63, %64 : vector<2x32xf32>
    %66 = math.tanh %65 : vector<2x32xf32>
    %67 = arith.mulf %62, %66 : vector<2x32xf32>
    %c0_44 = arith.constant 0 : index
    %c0_45 = arith.constant 0 : index
    %68 = vector.load %arg14[%c0_44, %c0_45] : memref<16x32xf32, #tpu.memory_space<vmem>>, vector<2x32xf32>
    tpu.vector_store %arg14[%c0_44, %c0_45], %67 {strides = array<i32>} : memref<16x32xf32, #tpu.memory_space<vmem>>, vector<2x32xf32>,
    %c1_46 = arith.constant 1 : index
    %c0_47 = arith.constant 0 : index
    %c0_48 = arith.constant 0 : index
    %c0_49 = arith.constant 0 : index
    %69 = vector.load %arg1[%c1_46, %c0_47, %c0_48, %c0_49] : memref<8x4x2x32xf32, #tpu.memory_space<vmem>>, vector<1x1x2x32xf32>
    %70 = vector.shape_cast %69 : vector<1x1x2x32xf32> to vector<2x32xf32>
    %cst_50 = arith.constant dense<0.000000e+00> : vector<2x32xf32>
    %71 = tpu.matmul %67, %4, %cst_50 {dimension_numbers = #tpu.dot_dimension_numbers<[1], [0], [0], [1], [0, 0, 1, 1], [], []>} : vector<2x32xf32>, vector<32x32xf32>, vector<2x32xf32> -> vector<2x32xf32>
    %72 = arith.addf %70, %71 : vector<2x32xf32>
    %73 = math.absf %72 : vector<2x32xf32>
    %cst_51 = arith.constant 0.000000e+00 : f32
    %74 = vector.broadcast %cst_51 : f32 to vector<2x32xf32>
    %75 = arith.subf %74, %73 : vector<2x32xf32>
    %76 = math.exp %75 : vector<2x32xf32>
    %cst_52 = arith.constant 0.000000e+00 : f32
    %77 = vector.broadcast %cst_52 : f32 to vector<2x32xf32>
    %78 = arith.cmpf oge, %72, %77 : vector<2x32xf32>
    %cst_53 = arith.constant 1.000000e+00 : f32
    %79 = vector.broadcast %cst_53 : f32 to vector<2x32xf32>
    %80 = arith.select %78, %79, %76 : vector<2x32xi1>, vector<2x32xf32>
    %cst_54 = arith.constant 1.000000e+00 : f32
    %81 = vector.broadcast %cst_54 : f32 to vector<2x32xf32>
    %82 = arith.addf %81, %76 : vector<2x32xf32>
    %83 = arith.divf %80, %82 : vector<2x32xf32>
    %c1_55 = arith.constant 1 : index
    %c1_56 = arith.constant 1 : index
    %c0_57 = arith.constant 0 : index
    %c0_58 = arith.constant 0 : index
    %84 = vector.load %arg1[%c1_55, %c1_56, %c0_57, %c0_58] : memref<8x4x2x32xf32, #tpu.memory_space<vmem>>, vector<1x1x2x32xf32>
    %85 = vector.shape_cast %84 : vector<1x1x2x32xf32> to vector<2x32xf32>
    %cst_59 = arith.constant dense<0.000000e+00> : vector<2x32xf32>
    %86 = tpu.matmul %67, %6, %cst_59 {dimension_numbers = #tpu.dot_dimension_numbers<[1], [0], [0], [1], [0, 0, 1, 1], [], []>} : vector<2x32xf32>, vector<32x32xf32>, vector<2x32xf32> -> vector<2x32xf32>
    %87 = arith.addf %85, %86 : vector<2x32xf32>
    %88 = math.absf %87 : vector<2x32xf32>
    %cst_60 = arith.constant 0.000000e+00 : f32
    %89 = vector.broadcast %cst_60 : f32 to vector<2x32xf32>
    %90 = arith.subf %89, %88 : vector<2x32xf32>
    %91 = math.exp %90 : vector<2x32xf32>
    %cst_61 = arith.constant 0.000000e+00 : f32
    %92 = vector.broadcast %cst_61 : f32 to vector<2x32xf32>
    %93 = arith.cmpf oge, %87, %92 : vector<2x32xf32>
    %cst_62 = arith.constant 1.000000e+00 : f32
    %94 = vector.broadcast %cst_62 : f32 to vector<2x32xf32>
    %95 = arith.select %93, %94, %91 : vector<2x32xi1>, vector<2x32xf32>
    %cst_63 = arith.constant 1.000000e+00 : f32
    %96 = vector.broadcast %cst_63 : f32 to vector<2x32xf32>
    %97 = arith.addf %96, %91 : vector<2x32xf32>
    %98 = arith.divf %95, %97 : vector<2x32xf32>
    %c1_64 = arith.constant 1 : index
    %c2_65 = arith.constant 2 : index
    %c0_66 = arith.constant 0 : index
    %c0_67 = arith.constant 0 : index
    %99 = vector.load %arg1[%c1_64, %c2_65, %c0_66, %c0_67] : memref<8x4x2x32xf32, #tpu.memory_space<vmem>>, vector<1x1x2x32xf32>
    %100 = vector.shape_cast %99 : vector<1x1x2x32xf32> to vector<2x32xf32>
    %cst_68 = arith.constant dense<0.000000e+00> : vector<2x32xf32>
    %101 = tpu.matmul %67, %8, %cst_68 {dimension_numbers = #tpu.dot_dimension_numbers<[1], [0], [0], [1], [0, 0, 1, 1], [], []>} : vector<2x32xf32>, vector<32x32xf32>, vector<2x32xf32> -> vector<2x32xf32>
    %102 = arith.addf %100, %101 : vector<2x32xf32>
    %103 = math.tanh %102 : vector<2x32xf32>
    %c1_69 = arith.constant 1 : index
    %c3_70 = arith.constant 3 : index
    %c0_71 = arith.constant 0 : index
    %c0_72 = arith.constant 0 : index
    %104 = vector.load %arg1[%c1_69, %c3_70, %c0_71, %c0_72] : memref<8x4x2x32xf32, #tpu.memory_space<vmem>>, vector<1x1x2x32xf32>
    %105 = vector.shape_cast %104 : vector<1x1x2x32xf32> to vector<2x32xf32>
    %cst_73 = arith.constant dense<0.000000e+00> : vector<2x32xf32>
    %106 = tpu.matmul %67, %10, %cst_73 {dimension_numbers = #tpu.dot_dimension_numbers<[1], [0], [0], [1], [0, 0, 1, 1], [], []>} : vector<2x32xf32>, vector<32x32xf32>, vector<2x32xf32> -> vector<2x32xf32>
    %107 = arith.addf %105, %106 : vector<2x32xf32>
    %108 = math.absf %107 : vector<2x32xf32>
    %cst_74 = arith.constant 0.000000e+00 : f32
    %109 = vector.broadcast %cst_74 : f32 to vector<2x32xf32>
    %110 = arith.subf %109, %108 : vector<2x32xf32>
    %111 = math.exp %110 : vector<2x32xf32>
    %cst_75 = arith.constant 0.000000e+00 : f32
    %112 = vector.broadcast %cst_75 : f32 to vector<2x32xf32>
    %113 = arith.cmpf oge, %107, %112 : vector<2x32xf32>
    %cst_76 = arith.constant 1.000000e+00 : f32
    %114 = vector.broadcast %cst_76 : f32 to vector<2x32xf32>
    %115 = arith.select %113, %114, %111 : vector<2x32xi1>, vector<2x32xf32>
    %cst_77 = arith.constant 1.000000e+00 : f32
    %116 = vector.broadcast %cst_77 : f32 to vector<2x32xf32>
    %117 = arith.addf %116, %111 : vector<2x32xf32>
    %118 = arith.divf %115, %117 : vector<2x32xf32>
    %119 = arith.mulf %98, %65 : vector<2x32xf32>
    %120 = arith.mulf %83, %103 : vector<2x32xf32>
    %121 = arith.addf %119, %120 : vector<2x32xf32>
    %122 = math.tanh %121 : vector<2x32xf32>
    %123 = arith.mulf %118, %122 : vector<2x32xf32>
    %c2_78 = arith.constant 2 : index
    %c0_79 = arith.constant 0 : index
    %124 = vector.load %arg14[%c2_78, %c0_79] : memref<16x32xf32, #tpu.memory_space<vmem>>, vector<2x32xf32>
    tpu.vector_store %arg14[%c2_78, %c0_79], %123 {strides = array<i32>} : memref<16x32xf32, #tpu.memory_space<vmem>>, vector<2x32xf32>,
    %c2_80 = arith.constant 2 : index
    %c0_81 = arith.constant 0 : index
    %c0_82 = arith.constant 0 : index
    %c0_83 = arith.constant 0 : index
    %125 = vector.load %arg1[%c2_80, %c0_81, %c0_82, %c0_83] : memref<8x4x2x32xf32, #tpu.memory_space<vmem>>, vector<1x1x2x32xf32>
    %126 = vector.shape_cast %125 : vector<1x1x2x32xf32> to vector<2x32xf32>
    %cst_84 = arith.constant dense<0.000000e+00> : vector<2x32xf32>
    %127 = tpu.matmul %123, %4, %cst_84 {dimension_numbers = #tpu.dot_dimension_numbers<[1], [0], [0], [1], [0, 0, 1, 1], [], []>} : vector<2x32xf32>, vector<32x32xf32>, vector<2x32xf32> -> vector<2x32xf32>
    %128 = arith.addf %126, %127 : vector<2x32xf32>
    %129 = math.absf %128 : vector<2x32xf32>
    %cst_85 = arith.constant 0.000000e+00 : f32
    %130 = vector.broadcast %cst_85 : f32 to vector<2x32xf32>
    %131 = arith.subf %130, %129 : vector<2x32xf32>
    %132 = math.exp %131 : vector<2x32xf32>
    %cst_86 = arith.constant 0.000000e+00 : f32
    %133 = vector.broadcast %cst_86 : f32 to vector<2x32xf32>
    %134 = arith.cmpf oge, %128, %133 : vector<2x32xf32>
    %cst_87 = arith.constant 1.000000e+00 : f32
    %135 = vector.broadcast %cst_87 : f32 to vector<2x32xf32>
    %136 = arith.select %134, %135, %132 : vector<2x32xi1>, vector<2x32xf32>
    %cst_88 = arith.constant 1.000000e+00 : f32
    %137 = vector.broadcast %cst_88 : f32 to vector<2x32xf32>
    %138 = arith.addf %137, %132 : vector<2x32xf32>
    %139 = arith.divf %136, %138 : vector<2x32xf32>
    %c2_89 = arith.constant 2 : index
    %c1_90 = arith.constant 1 : index
    %c0_91 = arith.constant 0 : index
    %c0_92 = arith.constant 0 : index
    %140 = vector.load %arg1[%c2_89, %c1_90, %c0_91, %c0_92] : memref<8x4x2x32xf32, #tpu.memory_space<vmem>>, vector<1x1x2x32xf32>
    %141 = vector.shape_cast %140 : vector<1x1x2x32xf32> to vector<2x32xf32>
    %cst_93 = arith.constant dense<0.000000e+00> : vector<2x32xf32>
    %142 = tpu.matmul %123, %6, %cst_93 {dimension_numbers = #tpu.dot_dimension_numbers<[1], [0], [0], [1], [0, 0, 1, 1], [], []>} : vector<2x32xf32>, vector<32x32xf32>, vector<2x32xf32> -> vector<2x32xf32>
    %143 = arith.addf %141, %142 : vector<2x32xf32>
    %144 = math.absf %143 : vector<2x32xf32>
    %cst_94 = arith.constant 0.000000e+00 : f32
    %145 = vector.broadcast %cst_94 : f32 to vector<2x32xf32>
    %146 = arith.subf %145, %144 : vector<2x32xf32>
    %147 = math.exp %146 : vector<2x32xf32>
    %cst_95 = arith.constant 0.000000e+00 : f32
    %148 = vector.broadcast %cst_95 : f32 to vector<2x32xf32>
    %149 = arith.cmpf oge, %143, %148 : vector<2x32xf32>
    %cst_96 = arith.constant 1.000000e+00 : f32
    %150 = vector.broadcast %cst_96 : f32 to vector<2x32xf32>
    %151 = arith.select %149, %150, %147 : vector<2x32xi1>, vector<2x32xf32>
    %cst_97 = arith.constant 1.000000e+00 : f32
    %152 = vector.broadcast %cst_97 : f32 to vector<2x32xf32>
    %153 = arith.addf %152, %147 : vector<2x32xf32>
    %154 = arith.divf %151, %153 : vector<2x32xf32>
    %c2_98 = arith.constant 2 : index
    %c2_99 = arith.constant 2 : index
    %c0_100 = arith.constant 0 : index
    %c0_101 = arith.constant 0 : index
    %155 = vector.load %arg1[%c2_98, %c2_99, %c0_100, %c0_101] : memref<8x4x2x32xf32, #tpu.memory_space<vmem>>, vector<1x1x2x32xf32>
    %156 = vector.shape_cast %155 : vector<1x1x2x32xf32> to vector<2x32xf32>
    %cst_102 = arith.constant dense<0.000000e+00> : vector<2x32xf32>
    %157 = tpu.matmul %123, %8, %cst_102 {dimension_numbers = #tpu.dot_dimension_numbers<[1], [0], [0], [1], [0, 0, 1, 1], [], []>} : vector<2x32xf32>, vector<32x32xf32>, vector<2x32xf32> -> vector<2x32xf32>
    %158 = arith.addf %156, %157 : vector<2x32xf32>
    %159 = math.tanh %158 : vector<2x32xf32>
    %c2_103 = arith.constant 2 : index
    %c3_104 = arith.constant 3 : index
    %c0_105 = arith.constant 0 : index
    %c0_106 = arith.constant 0 : index
    %160 = vector.load %arg1[%c2_103, %c3_104, %c0_105, %c0_106] : memref<8x4x2x32xf32, #tpu.memory_space<vmem>>, vector<1x1x2x32xf32>
    %161 = vector.shape_cast %160 : vector<1x1x2x32xf32> to vector<2x32xf32>
    %cst_107 = arith.constant dense<0.000000e+00> : vector<2x32xf32>
    %162 = tpu.matmul %123, %10, %cst_107 {dimension_numbers = #tpu.dot_dimension_numbers<[1], [0], [0], [1], [0, 0, 1, 1], [], []>} : vector<2x32xf32>, vector<32x32xf32>, vector<2x32xf32> -> vector<2x32xf32>
    %163 = arith.addf %161, %162 : vector<2x32xf32>
    %164 = math.absf %163 : vector<2x32xf32>
    %cst_108 = arith.constant 0.000000e+00 : f32
    %165 = vector.broadcast %cst_108 : f32 to vector<2x32xf32>
    %166 = arith.subf %165, %164 : vector<2x32xf32>
    %167 = math.exp %166 : vector<2x32xf32>
    %cst_109 = arith.constant 0.000000e+00 : f32
    %168 = vector.broadcast %cst_109 : f32 to vector<2x32xf32>
    %169 = arith.cmpf oge, %163, %168 : vector<2x32xf32>
    %cst_110 = arith.constant 1.000000e+00 : f32
    %170 = vector.broadcast %cst_110 : f32 to vector<2x32xf32>
    %171 = arith.select %169, %170, %167 : vector<2x32xi1>, vector<2x32xf32>
    %cst_111 = arith.constant 1.000000e+00 : f32
    %172 = vector.broadcast %cst_111 : f32 to vector<2x32xf32>
    %173 = arith.addf %172, %167 : vector<2x32xf32>
    %174 = arith.divf %171, %173 : vector<2x32xf32>
    %175 = arith.mulf %154, %121 : vector<2x32xf32>
    %176 = arith.mulf %139, %159 : vector<2x32xf32>
    %177 = arith.addf %175, %176 : vector<2x32xf32>
    %178 = math.tanh %177 : vector<2x32xf32>
    %179 = arith.mulf %174, %178 : vector<2x32xf32>
    %c4 = arith.constant 4 : index
    %c0_112 = arith.constant 0 : index
    %180 = vector.load %arg14[%c4, %c0_112] : memref<16x32xf32, #tpu.memory_space<vmem>>, vector<2x32xf32>
    tpu.vector_store %arg14[%c4, %c0_112], %179 {strides = array<i32>} : memref<16x32xf32, #tpu.memory_space<vmem>>, vector<2x32xf32>,
    %c3_113 = arith.constant 3 : index
    %c0_114 = arith.constant 0 : index
    %c0_115 = arith.constant 0 : index
    %c0_116 = arith.constant 0 : index
    %181 = vector.load %arg1[%c3_113, %c0_114, %c0_115, %c0_116] : memref<8x4x2x32xf32, #tpu.memory_space<vmem>>, vector<1x1x2x32xf32>
    %182 = vector.shape_cast %181 : vector<1x1x2x32xf32> to vector<2x32xf32>
    %cst_117 = arith.constant dense<0.000000e+00> : vector<2x32xf32>
    %183 = tpu.matmul %179, %4, %cst_117 {dimension_numbers = #tpu.dot_dimension_numbers<[1], [0], [0], [1], [0, 0, 1, 1], [], []>} : vector<2x32xf32>, vector<32x32xf32>, vector<2x32xf32> -> vector<2x32xf32>
    %184 = arith.addf %182, %183 : vector<2x32xf32>
    %185 = math.absf %184 : vector<2x32xf32>
    %cst_118 = arith.constant 0.000000e+00 : f32
    %186 = vector.broadcast %cst_118 : f32 to vector<2x32xf32>
    %187 = arith.subf %186, %185 : vector<2x32xf32>
    %188 = math.exp %187 : vector<2x32xf32>
    %cst_119 = arith.constant 0.000000e+00 : f32
    %189 = vector.broadcast %cst_119 : f32 to vector<2x32xf32>
    %190 = arith.cmpf oge, %184, %189 : vector<2x32xf32>
    %cst_120 = arith.constant 1.000000e+00 : f32
    %191 = vector.broadcast %cst_120 : f32 to vector<2x32xf32>
    %192 = arith.select %190, %191, %188 : vector<2x32xi1>, vector<2x32xf32>
    %cst_121 = arith.constant 1.000000e+00 : f32
    %193 = vector.broadcast %cst_121 : f32 to vector<2x32xf32>
    %194 = arith.addf %193, %188 : vector<2x32xf32>
    %195 = arith.divf %192, %194 : vector<2x32xf32>
    %c3_122 = arith.constant 3 : index
    %c1_123 = arith.constant 1 : index
    %c0_124 = arith.constant 0 : index
    %c0_125 = arith.constant 0 : index
    %196 = vector.load %arg1[%c3_122, %c1_123, %c0_124, %c0_125] : memref<8x4x2x32xf32, #tpu.memory_space<vmem>>, vector<1x1x2x32xf32>
    %197 = vector.shape_cast %196 : vector<1x1x2x32xf32> to vector<2x32xf32>
    %cst_126 = arith.constant dense<0.000000e+00> : vector<2x32xf32>
    %198 = tpu.matmul %179, %6, %cst_126 {dimension_numbers = #tpu.dot_dimension_numbers<[1], [0], [0], [1], [0, 0, 1, 1], [], []>} : vector<2x32xf32>, vector<32x32xf32>, vector<2x32xf32> -> vector<2x32xf32>
    %199 = arith.addf %197, %198 : vector<2x32xf32>
    %200 = math.absf %199 : vector<2x32xf32>
    %cst_127 = arith.constant 0.000000e+00 : f32
    %201 = vector.broadcast %cst_127 : f32 to vector<2x32xf32>
    %202 = arith.subf %201, %200 : vector<2x32xf32>
    %203 = math.exp %202 : vector<2x32xf32>
    %cst_128 = arith.constant 0.000000e+00 : f32
    %204 = vector.broadcast %cst_128 : f32 to vector<2x32xf32>
    %205 = arith.cmpf oge, %199, %204 : vector<2x32xf32>
    %cst_129 = arith.constant 1.000000e+00 : f32
    %206 = vector.broadcast %cst_129 : f32 to vector<2x32xf32>
    %207 = arith.select %205, %206, %203 : vector<2x32xi1>, vector<2x32xf32>
    %cst_130 = arith.constant 1.000000e+00 : f32
    %208 = vector.broadcast %cst_130 : f32 to vector<2x32xf32>
    %209 = arith.addf %208, %203 : vector<2x32xf32>
    %210 = arith.divf %207, %209 : vector<2x32xf32>
    %c3_131 = arith.constant 3 : index
    %c2_132 = arith.constant 2 : index
    %c0_133 = arith.constant 0 : index
    %c0_134 = arith.constant 0 : index
    %211 = vector.load %arg1[%c3_131, %c2_132, %c0_133, %c0_134] : memref<8x4x2x32xf32, #tpu.memory_space<vmem>>, vector<1x1x2x32xf32>
    %212 = vector.shape_cast %211 : vector<1x1x2x32xf32> to vector<2x32xf32>
    %cst_135 = arith.constant dense<0.000000e+00> : vector<2x32xf32>
    %213 = tpu.matmul %179, %8, %cst_135 {dimension_numbers = #tpu.dot_dimension_numbers<[1], [0], [0], [1], [0, 0, 1, 1], [], []>} : vector<2x32xf32>, vector<32x32xf32>, vector<2x32xf32> -> vector<2x32xf32>
    %214 = arith.addf %212, %213 : vector<2x32xf32>
    %215 = math.tanh %214 : vector<2x32xf32>
    %c3_136 = arith.constant 3 : index
    %c3_137 = arith.constant 3 : index
    %c0_138 = arith.constant 0 : index
    %c0_139 = arith.constant 0 : index
    %216 = vector.load %arg1[%c3_136, %c3_137, %c0_138, %c0_139] : memref<8x4x2x32xf32, #tpu.memory_space<vmem>>, vector<1x1x2x32xf32>
    %217 = vector.shape_cast %216 : vector<1x1x2x32xf32> to vector<2x32xf32>
    %cst_140 = arith.constant dense<0.000000e+00> : vector<2x32xf32>
    %218 = tpu.matmul %179, %10, %cst_140 {dimension_numbers = #tpu.dot_dimension_numbers<[1], [0], [0], [1], [0, 0, 1, 1], [], []>} : vector<2x32xf32>, vector<32x32xf32>, vector<2x32xf32> -> vector<2x32xf32>
    %219 = arith.addf %217, %218 : vector<2x32xf32>
    %220 = math.absf %219 : vector<2x32xf32>
    %cst_141 = arith.constant 0.000000e+00 : f32
    %221 = vector.broadcast %cst_141 : f32 to vector<2x32xf32>
    %222 = arith.subf %221, %220 : vector<2x32xf32>
    %223 = math.exp %222 : vector<2x32xf32>
    %cst_142 = arith.constant 0.000000e+00 : f32
    %224 = vector.broadcast %cst_142 : f32 to vector<2x32xf32>
    %225 = arith.cmpf oge, %219, %224 : vector<2x32xf32>
    %cst_143 = arith.constant 1.000000e+00 : f32
    %226 = vector.broadcast %cst_143 : f32 to vector<2x32xf32>
    %227 = arith.select %225, %226, %223 : vector<2x32xi1>, vector<2x32xf32>
    %cst_144 = arith.constant 1.000000e+00 : f32
    %228 = vector.broadcast %cst_144 : f32 to vector<2x32xf32>
    %229 = arith.addf %228, %223 : vector<2x32xf32>
    %230 = arith.divf %227, %229 : vector<2x32xf32>
    %231 = arith.mulf %210, %177 : vector<2x32xf32>
    %232 = arith.mulf %195, %215 : vector<2x32xf32>
    %233 = arith.addf %231, %232 : vector<2x32xf32>
    %234 = math.tanh %233 : vector<2x32xf32>
    %235 = arith.mulf %230, %234 : vector<2x32xf32>
    %c6 = arith.constant 6 : index
    %c0_145 = arith.constant 0 : index
    %236 = vector.load %arg14[%c6, %c0_145] : memref<16x32xf32, #tpu.memory_space<vmem>>, vector<2x32xf32>
    tpu.vector_store %arg14[%c6, %c0_145], %235 {strides = array<i32>} : memref<16x32xf32, #tpu.memory_space<vmem>>, vector<2x32xf32>,
    %c4_146 = arith.constant 4 : index
    %c0_147 = arith.constant 0 : index
    %c0_148 = arith.constant 0 : index
    %c0_149 = arith.constant 0 : index
    %237 = vector.load %arg1[%c4_146, %c0_147, %c0_148, %c0_149] : memref<8x4x2x32xf32, #tpu.memory_space<vmem>>, vector<1x1x2x32xf32>
    %238 = vector.shape_cast %237 : vector<1x1x2x32xf32> to vector<2x32xf32>
    %cst_150 = arith.constant dense<0.000000e+00> : vector<2x32xf32>
    %239 = tpu.matmul %235, %4, %cst_150 {dimension_numbers = #tpu.dot_dimension_numbers<[1], [0], [0], [1], [0, 0, 1, 1], [], []>} : vector<2x32xf32>, vector<32x32xf32>, vector<2x32xf32> -> vector<2x32xf32>
    %240 = arith.addf %238, %239 : vector<2x32xf32>
    %241 = math.absf %240 : vector<2x32xf32>
    %cst_151 = arith.constant 0.000000e+00 : f32
    %242 = vector.broadcast %cst_151 : f32 to vector<2x32xf32>
    %243 = arith.subf %242, %241 : vector<2x32xf32>
    %244 = math.exp %243 : vector<2x32xf32>
    %cst_152 = arith.constant 0.000000e+00 : f32
    %245 = vector.broadcast %cst_152 : f32 to vector<2x32xf32>
    %246 = arith.cmpf oge, %240, %245 : vector<2x32xf32>
    %cst_153 = arith.constant 1.000000e+00 : f32
    %247 = vector.broadcast %cst_153 : f32 to vector<2x32xf32>
    %248 = arith.select %246, %247, %244 : vector<2x32xi1>, vector<2x32xf32>
    %cst_154 = arith.constant 1.000000e+00 : f32
    %249 = vector.broadcast %cst_154 : f32 to vector<2x32xf32>
    %250 = arith.addf %249, %244 : vector<2x32xf32>
    %251 = arith.divf %248, %250 : vector<2x32xf32>
    %c4_155 = arith.constant 4 : index
    %c1_156 = arith.constant 1 : index
    %c0_157 = arith.constant 0 : index
    %c0_158 = arith.constant 0 : index
    %252 = vector.load %arg1[%c4_155, %c1_156, %c0_157, %c0_158] : memref<8x4x2x32xf32, #tpu.memory_space<vmem>>, vector<1x1x2x32xf32>
    %253 = vector.shape_cast %252 : vector<1x1x2x32xf32> to vector<2x32xf32>
    %cst_159 = arith.constant dense<0.000000e+00> : vector<2x32xf32>
    %254 = tpu.matmul %235, %6, %cst_159 {dimension_numbers = #tpu.dot_dimension_numbers<[1], [0], [0], [1], [0, 0, 1, 1], [], []>} : vector<2x32xf32>, vector<32x32xf32>, vector<2x32xf32> -> vector<2x32xf32>
    %255 = arith.addf %253, %254 : vector<2x32xf32>
    %256 = math.absf %255 : vector<2x32xf32>
    %cst_160 = arith.constant 0.000000e+00 : f32
    %257 = vector.broadcast %cst_160 : f32 to vector<2x32xf32>
    %258 = arith.subf %257, %256 : vector<2x32xf32>
    %259 = math.exp %258 : vector<2x32xf32>
    %cst_161 = arith.constant 0.000000e+00 : f32
    %260 = vector.broadcast %cst_161 : f32 to vector<2x32xf32>
    %261 = arith.cmpf oge, %255, %260 : vector<2x32xf32>
    %cst_162 = arith.constant 1.000000e+00 : f32
    %262 = vector.broadcast %cst_162 : f32 to vector<2x32xf32>
    %263 = arith.select %261, %262, %259 : vector<2x32xi1>, vector<2x32xf32>
    %cst_163 = arith.constant 1.000000e+00 : f32
    %264 = vector.broadcast %cst_163 : f32 to vector<2x32xf32>
    %265 = arith.addf %264, %259 : vector<2x32xf32>
    %266 = arith.divf %263, %265 : vector<2x32xf32>
    %c4_164 = arith.constant 4 : index
    %c2_165 = arith.constant 2 : index
    %c0_166 = arith.constant 0 : index
    %c0_167 = arith.constant 0 : index
    %267 = vector.load %arg1[%c4_164, %c2_165, %c0_166, %c0_167] : memref<8x4x2x32xf32, #tpu.memory_space<vmem>>, vector<1x1x2x32xf32>
    %268 = vector.shape_cast %267 : vector<1x1x2x32xf32> to vector<2x32xf32>
    %cst_168 = arith.constant dense<0.000000e+00> : vector<2x32xf32>
    %269 = tpu.matmul %235, %8, %cst_168 {dimension_numbers = #tpu.dot_dimension_numbers<[1], [0], [0], [1], [0, 0, 1, 1], [], []>} : vector<2x32xf32>, vector<32x32xf32>, vector<2x32xf32> -> vector<2x32xf32>
    %270 = arith.addf %268, %269 : vector<2x32xf32>
    %271 = math.tanh %270 : vector<2x32xf32>
    %c4_169 = arith.constant 4 : index
    %c3_170 = arith.constant 3 : index
    %c0_171 = arith.constant 0 : index
    %c0_172 = arith.constant 0 : index
    %272 = vector.load %arg1[%c4_169, %c3_170, %c0_171, %c0_172] : memref<8x4x2x32xf32, #tpu.memory_space<vmem>>, vector<1x1x2x32xf32>
    %273 = vector.shape_cast %272 : vector<1x1x2x32xf32> to vector<2x32xf32>
    %cst_173 = arith.constant dense<0.000000e+00> : vector<2x32xf32>
    %274 = tpu.matmul %235, %10, %cst_173 {dimension_numbers = #tpu.dot_dimension_numbers<[1], [0], [0], [1], [0, 0, 1, 1], [], []>} : vector<2x32xf32>, vector<32x32xf32>, vector<2x32xf32> -> vector<2x32xf32>
    %275 = arith.addf %273, %274 : vector<2x32xf32>
    %276 = math.absf %275 : vector<2x32xf32>
    %cst_174 = arith.constant 0.000000e+00 : f32
    %277 = vector.broadcast %cst_174 : f32 to vector<2x32xf32>
    %278 = arith.subf %277, %276 : vector<2x32xf32>
    %279 = math.exp %278 : vector<2x32xf32>
    %cst_175 = arith.constant 0.000000e+00 : f32
    %280 = vector.broadcast %cst_175 : f32 to vector<2x32xf32>
    %281 = arith.cmpf oge, %275, %280 : vector<2x32xf32>
    %cst_176 = arith.constant 1.000000e+00 : f32
    %282 = vector.broadcast %cst_176 : f32 to vector<2x32xf32>
    %283 = arith.select %281, %282, %279 : vector<2x32xi1>, vector<2x32xf32>
    %cst_177 = arith.constant 1.000000e+00 : f32
    %284 = vector.broadcast %cst_177 : f32 to vector<2x32xf32>
    %285 = arith.addf %284, %279 : vector<2x32xf32>
    %286 = arith.divf %283, %285 : vector<2x32xf32>
    %287 = arith.mulf %266, %233 : vector<2x32xf32>
    %288 = arith.mulf %251, %271 : vector<2x32xf32>
    %289 = arith.addf %287, %288 : vector<2x32xf32>
    %290 = math.tanh %289 : vector<2x32xf32>
    %291 = arith.mulf %286, %290 : vector<2x32xf32>
    %c8 = arith.constant 8 : index
    %c0_178 = arith.constant 0 : index
    %292 = vector.load %arg14[%c8, %c0_178] : memref<16x32xf32, #tpu.memory_space<vmem>>, vector<2x32xf32>
    tpu.vector_store %arg14[%c8, %c0_178], %291 {strides = array<i32>} : memref<16x32xf32, #tpu.memory_space<vmem>>, vector<2x32xf32>,
    %c5 = arith.constant 5 : index
    %c0_179 = arith.constant 0 : index
    %c0_180 = arith.constant 0 : index
    %c0_181 = arith.constant 0 : index
    %293 = vector.load %arg1[%c5, %c0_179, %c0_180, %c0_181] : memref<8x4x2x32xf32, #tpu.memory_space<vmem>>, vector<1x1x2x32xf32>
    %294 = vector.shape_cast %293 : vector<1x1x2x32xf32> to vector<2x32xf32>
    %cst_182 = arith.constant dense<0.000000e+00> : vector<2x32xf32>
    %295 = tpu.matmul %291, %4, %cst_182 {dimension_numbers = #tpu.dot_dimension_numbers<[1], [0], [0], [1], [0, 0, 1, 1], [], []>} : vector<2x32xf32>, vector<32x32xf32>, vector<2x32xf32> -> vector<2x32xf32>
    %296 = arith.addf %294, %295 : vector<2x32xf32>
    %297 = math.absf %296 : vector<2x32xf32>
    %cst_183 = arith.constant 0.000000e+00 : f32
    %298 = vector.broadcast %cst_183 : f32 to vector<2x32xf32>
    %299 = arith.subf %298, %297 : vector<2x32xf32>
    %300 = math.exp %299 : vector<2x32xf32>
    %cst_184 = arith.constant 0.000000e+00 : f32
    %301 = vector.broadcast %cst_184 : f32 to vector<2x32xf32>
    %302 = arith.cmpf oge, %296, %301 : vector<2x32xf32>
    %cst_185 = arith.constant 1.000000e+00 : f32
    %303 = vector.broadcast %cst_185 : f32 to vector<2x32xf32>
    %304 = arith.select %302, %303, %300 : vector<2x32xi1>, vector<2x32xf32>
    %cst_186 = arith.constant 1.000000e+00 : f32
    %305 = vector.broadcast %cst_186 : f32 to vector<2x32xf32>
    %306 = arith.addf %305, %300 : vector<2x32xf32>
    %307 = arith.divf %304, %306 : vector<2x32xf32>
    %c5_187 = arith.constant 5 : index
    %c1_188 = arith.constant 1 : index
    %c0_189 = arith.constant 0 : index
    %c0_190 = arith.constant 0 : index
    %308 = vector.load %arg1[%c5_187, %c1_188, %c0_189, %c0_190] : memref<8x4x2x32xf32, #tpu.memory_space<vmem>>, vector<1x1x2x32xf32>
    %309 = vector.shape_cast %308 : vector<1x1x2x32xf32> to vector<2x32xf32>
    %cst_191 = arith.constant dense<0.000000e+00> : vector<2x32xf32>
    %310 = tpu.matmul %291, %6, %cst_191 {dimension_numbers = #tpu.dot_dimension_numbers<[1], [0], [0], [1], [0, 0, 1, 1], [], []>} : vector<2x32xf32>, vector<32x32xf32>, vector<2x32xf32> -> vector<2x32xf32>
    %311 = arith.addf %309, %310 : vector<2x32xf32>
    %312 = math.absf %311 : vector<2x32xf32>
    %cst_192 = arith.constant 0.000000e+00 : f32
    %313 = vector.broadcast %cst_192 : f32 to vector<2x32xf32>
    %314 = arith.subf %313, %312 : vector<2x32xf32>
    %315 = math.exp %314 : vector<2x32xf32>
    %cst_193 = arith.constant 0.000000e+00 : f32
    %316 = vector.broadcast %cst_193 : f32 to vector<2x32xf32>
    %317 = arith.cmpf oge, %311, %316 : vector<2x32xf32>
    %cst_194 = arith.constant 1.000000e+00 : f32
    %318 = vector.broadcast %cst_194 : f32 to vector<2x32xf32>
    %319 = arith.select %317, %318, %315 : vector<2x32xi1>, vector<2x32xf32>
    %cst_195 = arith.constant 1.000000e+00 : f32
    %320 = vector.broadcast %cst_195 : f32 to vector<2x32xf32>
    %321 = arith.addf %320, %315 : vector<2x32xf32>
    %322 = arith.divf %319, %321 : vector<2x32xf32>
    %c5_196 = arith.constant 5 : index
    %c2_197 = arith.constant 2 : index
    %c0_198 = arith.constant 0 : index
    %c0_199 = arith.constant 0 : index
    %323 = vector.load %arg1[%c5_196, %c2_197, %c0_198, %c0_199] : memref<8x4x2x32xf32, #tpu.memory_space<vmem>>, vector<1x1x2x32xf32>
    %324 = vector.shape_cast %323 : vector<1x1x2x32xf32> to vector<2x32xf32>
    %cst_200 = arith.constant dense<0.000000e+00> : vector<2x32xf32>
    %325 = tpu.matmul %291, %8, %cst_200 {dimension_numbers = #tpu.dot_dimension_numbers<[1], [0], [0], [1], [0, 0, 1, 1], [], []>} : vector<2x32xf32>, vector<32x32xf32>, vector<2x32xf32> -> vector<2x32xf32>
    %326 = arith.addf %324, %325 : vector<2x32xf32>
    %327 = math.tanh %326 : vector<2x32xf32>
    %c5_201 = arith.constant 5 : index
    %c3_202 = arith.constant 3 : index
    %c0_203 = arith.constant 0 : index
    %c0_204 = arith.constant 0 : index
    %328 = vector.load %arg1[%c5_201, %c3_202, %c0_203, %c0_204] : memref<8x4x2x32xf32, #tpu.memory_space<vmem>>, vector<1x1x2x32xf32>
    %329 = vector.shape_cast %328 : vector<1x1x2x32xf32> to vector<2x32xf32>
    %cst_205 = arith.constant dense<0.000000e+00> : vector<2x32xf32>
    %330 = tpu.matmul %291, %10, %cst_205 {dimension_numbers = #tpu.dot_dimension_numbers<[1], [0], [0], [1], [0, 0, 1, 1], [], []>} : vector<2x32xf32>, vector<32x32xf32>, vector<2x32xf32> -> vector<2x32xf32>
    %331 = arith.addf %329, %330 : vector<2x32xf32>
    %332 = math.absf %331 : vector<2x32xf32>
    %cst_206 = arith.constant 0.000000e+00 : f32
    %333 = vector.broadcast %cst_206 : f32 to vector<2x32xf32>
    %334 = arith.subf %333, %332 : vector<2x32xf32>
    %335 = math.exp %334 : vector<2x32xf32>
    %cst_207 = arith.constant 0.000000e+00 : f32
    %336 = vector.broadcast %cst_207 : f32 to vector<2x32xf32>
    %337 = arith.cmpf oge, %331, %336 : vector<2x32xf32>
    %cst_208 = arith.constant 1.000000e+00 : f32
    %338 = vector.broadcast %cst_208 : f32 to vector<2x32xf32>
    %339 = arith.select %337, %338, %335 : vector<2x32xi1>, vector<2x32xf32>
    %cst_209 = arith.constant 1.000000e+00 : f32
    %340 = vector.broadcast %cst_209 : f32 to vector<2x32xf32>
    %341 = arith.addf %340, %335 : vector<2x32xf32>
    %342 = arith.divf %339, %341 : vector<2x32xf32>
    %343 = arith.mulf %322, %289 : vector<2x32xf32>
    %344 = arith.mulf %307, %327 : vector<2x32xf32>
    %345 = arith.addf %343, %344 : vector<2x32xf32>
    %346 = math.tanh %345 : vector<2x32xf32>
    %347 = arith.mulf %342, %346 : vector<2x32xf32>
    %c10 = arith.constant 10 : index
    %c0_210 = arith.constant 0 : index
    %348 = vector.load %arg14[%c10, %c0_210] : memref<16x32xf32, #tpu.memory_space<vmem>>, vector<2x32xf32>
    tpu.vector_store %arg14[%c10, %c0_210], %347 {strides = array<i32>} : memref<16x32xf32, #tpu.memory_space<vmem>>, vector<2x32xf32>,
    %c6_211 = arith.constant 6 : index
    %c0_212 = arith.constant 0 : index
    %c0_213 = arith.constant 0 : index
    %c0_214 = arith.constant 0 : index
    %349 = vector.load %arg1[%c6_211, %c0_212, %c0_213, %c0_214] : memref<8x4x2x32xf32, #tpu.memory_space<vmem>>, vector<1x1x2x32xf32>
    %350 = vector.shape_cast %349 : vector<1x1x2x32xf32> to vector<2x32xf32>
    %cst_215 = arith.constant dense<0.000000e+00> : vector<2x32xf32>
    %351 = tpu.matmul %347, %4, %cst_215 {dimension_numbers = #tpu.dot_dimension_numbers<[1], [0], [0], [1], [0, 0, 1, 1], [], []>} : vector<2x32xf32>, vector<32x32xf32>, vector<2x32xf32> -> vector<2x32xf32>
    %352 = arith.addf %350, %351 : vector<2x32xf32>
    %353 = math.absf %352 : vector<2x32xf32>
    %cst_216 = arith.constant 0.000000e+00 : f32
    %354 = vector.broadcast %cst_216 : f32 to vector<2x32xf32>
    %355 = arith.subf %354, %353 : vector<2x32xf32>
    %356 = math.exp %355 : vector<2x32xf32>
    %cst_217 = arith.constant 0.000000e+00 : f32
    %357 = vector.broadcast %cst_217 : f32 to vector<2x32xf32>
    %358 = arith.cmpf oge, %352, %357 : vector<2x32xf32>
    %cst_218 = arith.constant 1.000000e+00 : f32
    %359 = vector.broadcast %cst_218 : f32 to vector<2x32xf32>
    %360 = arith.select %358, %359, %356 : vector<2x32xi1>, vector<2x32xf32>
    %cst_219 = arith.constant 1.000000e+00 : f32
    %361 = vector.broadcast %cst_219 : f32 to vector<2x32xf32>
    %362 = arith.addf %361, %356 : vector<2x32xf32>
    %363 = arith.divf %360, %362 : vector<2x32xf32>
    %c6_220 = arith.constant 6 : index
    %c1_221 = arith.constant 1 : index
    %c0_222 = arith.constant 0 : index
    %c0_223 = arith.constant 0 : index
    %364 = vector.load %arg1[%c6_220, %c1_221, %c0_222, %c0_223] : memref<8x4x2x32xf32, #tpu.memory_space<vmem>>, vector<1x1x2x32xf32>
    %365 = vector.shape_cast %364 : vector<1x1x2x32xf32> to vector<2x32xf32>
    %cst_224 = arith.constant dense<0.000000e+00> : vector<2x32xf32>
    %366 = tpu.matmul %347, %6, %cst_224 {dimension_numbers = #tpu.dot_dimension_numbers<[1], [0], [0], [1], [0, 0, 1, 1], [], []>} : vector<2x32xf32>, vector<32x32xf32>, vector<2x32xf32> -> vector<2x32xf32>
    %367 = arith.addf %365, %366 : vector<2x32xf32>
    %368 = math.absf %367 : vector<2x32xf32>
    %cst_225 = arith.constant 0.000000e+00 : f32
    %369 = vector.broadcast %cst_225 : f32 to vector<2x32xf32>
    %370 = arith.subf %369, %368 : vector<2x32xf32>
    %371 = math.exp %370 : vector<2x32xf32>
    %cst_226 = arith.constant 0.000000e+00 : f32
    %372 = vector.broadcast %cst_226 : f32 to vector<2x32xf32>
    %373 = arith.cmpf oge, %367, %372 : vector<2x32xf32>
    %cst_227 = arith.constant 1.000000e+00 : f32
    %374 = vector.broadcast %cst_227 : f32 to vector<2x32xf32>
    %375 = arith.select %373, %374, %371 : vector<2x32xi1>, vector<2x32xf32>
    %cst_228 = arith.constant 1.000000e+00 : f32
    %376 = vector.broadcast %cst_228 : f32 to vector<2x32xf32>
    %377 = arith.addf %376, %371 : vector<2x32xf32>
    %378 = arith.divf %375, %377 : vector<2x32xf32>
    %c6_229 = arith.constant 6 : index
    %c2_230 = arith.constant 2 : index
    %c0_231 = arith.constant 0 : index
    %c0_232 = arith.constant 0 : index
    %379 = vector.load %arg1[%c6_229, %c2_230, %c0_231, %c0_232] : memref<8x4x2x32xf32, #tpu.memory_space<vmem>>, vector<1x1x2x32xf32>
    %380 = vector.shape_cast %379 : vector<1x1x2x32xf32> to vector<2x32xf32>
    %cst_233 = arith.constant dense<0.000000e+00> : vector<2x32xf32>
    %381 = tpu.matmul %347, %8, %cst_233 {dimension_numbers = #tpu.dot_dimension_numbers<[1], [0], [0], [1], [0, 0, 1, 1], [], []>} : vector<2x32xf32>, vector<32x32xf32>, vector<2x32xf32> -> vector<2x32xf32>
    %382 = arith.addf %380, %381 : vector<2x32xf32>
    %383 = math.tanh %382 : vector<2x32xf32>
    %c6_234 = arith.constant 6 : index
    %c3_235 = arith.constant 3 : index
    %c0_236 = arith.constant 0 : index
    %c0_237 = arith.constant 0 : index
    %384 = vector.load %arg1[%c6_234, %c3_235, %c0_236, %c0_237] : memref<8x4x2x32xf32, #tpu.memory_space<vmem>>, vector<1x1x2x32xf32>
    %385 = vector.shape_cast %384 : vector<1x1x2x32xf32> to vector<2x32xf32>
    %cst_238 = arith.constant dense<0.000000e+00> : vector<2x32xf32>
    %386 = tpu.matmul %347, %10, %cst_238 {dimension_numbers = #tpu.dot_dimension_numbers<[1], [0], [0], [1], [0, 0, 1, 1], [], []>} : vector<2x32xf32>, vector<32x32xf32>, vector<2x32xf32> -> vector<2x32xf32>
    %387 = arith.addf %385, %386 : vector<2x32xf32>
    %388 = math.absf %387 : vector<2x32xf32>
    %cst_239 = arith.constant 0.000000e+00 : f32
    %389 = vector.broadcast %cst_239 : f32 to vector<2x32xf32>
    %390 = arith.subf %389, %388 : vector<2x32xf32>
    %391 = math.exp %390 : vector<2x32xf32>
    %cst_240 = arith.constant 0.000000e+00 : f32
    %392 = vector.broadcast %cst_240 : f32 to vector<2x32xf32>
    %393 = arith.cmpf oge, %387, %392 : vector<2x32xf32>
    %cst_241 = arith.constant 1.000000e+00 : f32
    %394 = vector.broadcast %cst_241 : f32 to vector<2x32xf32>
    %395 = arith.select %393, %394, %391 : vector<2x32xi1>, vector<2x32xf32>
    %cst_242 = arith.constant 1.000000e+00 : f32
    %396 = vector.broadcast %cst_242 : f32 to vector<2x32xf32>
    %397 = arith.addf %396, %391 : vector<2x32xf32>
    %398 = arith.divf %395, %397 : vector<2x32xf32>
    %399 = arith.mulf %378, %345 : vector<2x32xf32>
    %400 = arith.mulf %363, %383 : vector<2x32xf32>
    %401 = arith.addf %399, %400 : vector<2x32xf32>
    %402 = math.tanh %401 : vector<2x32xf32>
    %403 = arith.mulf %398, %402 : vector<2x32xf32>
    %c12 = arith.constant 12 : index
    %c0_243 = arith.constant 0 : index
    %404 = vector.load %arg14[%c12, %c0_243] : memref<16x32xf32, #tpu.memory_space<vmem>>, vector<2x32xf32>
    tpu.vector_store %arg14[%c12, %c0_243], %403 {strides = array<i32>} : memref<16x32xf32, #tpu.memory_space<vmem>>, vector<2x32xf32>,
    %c7 = arith.constant 7 : index
    %c0_244 = arith.constant 0 : index
    %c0_245 = arith.constant 0 : index
    %c0_246 = arith.constant 0 : index
    %405 = vector.load %arg1[%c7, %c0_244, %c0_245, %c0_246] : memref<8x4x2x32xf32, #tpu.memory_space<vmem>>, vector<1x1x2x32xf32>
    %406 = vector.shape_cast %405 : vector<1x1x2x32xf32> to vector<2x32xf32>
    %cst_247 = arith.constant dense<0.000000e+00> : vector<2x32xf32>
    %407 = tpu.matmul %403, %4, %cst_247 {dimension_numbers = #tpu.dot_dimension_numbers<[1], [0], [0], [1], [0, 0, 1, 1], [], []>} : vector<2x32xf32>, vector<32x32xf32>, vector<2x32xf32> -> vector<2x32xf32>
    %408 = arith.addf %406, %407 : vector<2x32xf32>
    %409 = math.absf %408 : vector<2x32xf32>
    %cst_248 = arith.constant 0.000000e+00 : f32
    %410 = vector.broadcast %cst_248 : f32 to vector<2x32xf32>
    %411 = arith.subf %410, %409 : vector<2x32xf32>
    %412 = math.exp %411 : vector<2x32xf32>
    %cst_249 = arith.constant 0.000000e+00 : f32
    %413 = vector.broadcast %cst_249 : f32 to vector<2x32xf32>
    %414 = arith.cmpf oge, %408, %413 : vector<2x32xf32>
    %cst_250 = arith.constant 1.000000e+00 : f32
    %415 = vector.broadcast %cst_250 : f32 to vector<2x32xf32>
    %416 = arith.select %414, %415, %412 : vector<2x32xi1>, vector<2x32xf32>
    %cst_251 = arith.constant 1.000000e+00 : f32
    %417 = vector.broadcast %cst_251 : f32 to vector<2x32xf32>
    %418 = arith.addf %417, %412 : vector<2x32xf32>
    %419 = arith.divf %416, %418 : vector<2x32xf32>
    %c7_252 = arith.constant 7 : index
    %c1_253 = arith.constant 1 : index
    %c0_254 = arith.constant 0 : index
    %c0_255 = arith.constant 0 : index
    %420 = vector.load %arg1[%c7_252, %c1_253, %c0_254, %c0_255] : memref<8x4x2x32xf32, #tpu.memory_space<vmem>>, vector<1x1x2x32xf32>
    %421 = vector.shape_cast %420 : vector<1x1x2x32xf32> to vector<2x32xf32>
    %cst_256 = arith.constant dense<0.000000e+00> : vector<2x32xf32>
    %422 = tpu.matmul %403, %6, %cst_256 {dimension_numbers = #tpu.dot_dimension_numbers<[1], [0], [0], [1], [0, 0, 1, 1], [], []>} : vector<2x32xf32>, vector<32x32xf32>, vector<2x32xf32> -> vector<2x32xf32>
    %423 = arith.addf %421, %422 : vector<2x32xf32>
    %424 = math.absf %423 : vector<2x32xf32>
    %cst_257 = arith.constant 0.000000e+00 : f32
    %425 = vector.broadcast %cst_257 : f32 to vector<2x32xf32>
    %426 = arith.subf %425, %424 : vector<2x32xf32>
    %427 = math.exp %426 : vector<2x32xf32>
    %cst_258 = arith.constant 0.000000e+00 : f32
    %428 = vector.broadcast %cst_258 : f32 to vector<2x32xf32>
    %429 = arith.cmpf oge, %423, %428 : vector<2x32xf32>
    %cst_259 = arith.constant 1.000000e+00 : f32
    %430 = vector.broadcast %cst_259 : f32 to vector<2x32xf32>
    %431 = arith.select %429, %430, %427 : vector<2x32xi1>, vector<2x32xf32>
    %cst_260 = arith.constant 1.000000e+00 : f32
    %432 = vector.broadcast %cst_260 : f32 to vector<2x32xf32>
    %433 = arith.addf %432, %427 : vector<2x32xf32>
    %434 = arith.divf %431, %433 : vector<2x32xf32>
    %c7_261 = arith.constant 7 : index
    %c2_262 = arith.constant 2 : index
    %c0_263 = arith.constant 0 : index
    %c0_264 = arith.constant 0 : index
    %435 = vector.load %arg1[%c7_261, %c2_262, %c0_263, %c0_264] : memref<8x4x2x32xf32, #tpu.memory_space<vmem>>, vector<1x1x2x32xf32>
    %436 = vector.shape_cast %435 : vector<1x1x2x32xf32> to vector<2x32xf32>
    %cst_265 = arith.constant dense<0.000000e+00> : vector<2x32xf32>
    %437 = tpu.matmul %403, %8, %cst_265 {dimension_numbers = #tpu.dot_dimension_numbers<[1], [0], [0], [1], [0, 0, 1, 1], [], []>} : vector<2x32xf32>, vector<32x32xf32>, vector<2x32xf32> -> vector<2x32xf32>
    %438 = arith.addf %436, %437 : vector<2x32xf32>
    %439 = math.tanh %438 : vector<2x32xf32>
    %c7_266 = arith.constant 7 : index
    %c3_267 = arith.constant 3 : index
    %c0_268 = arith.constant 0 : index
    %c0_269 = arith.constant 0 : index
    %440 = vector.load %arg1[%c7_266, %c3_267, %c0_268, %c0_269] : memref<8x4x2x32xf32, #tpu.memory_space<vmem>>, vector<1x1x2x32xf32>
    %441 = vector.shape_cast %440 : vector<1x1x2x32xf32> to vector<2x32xf32>
    %cst_270 = arith.constant dense<0.000000e+00> : vector<2x32xf32>
    %442 = tpu.matmul %403, %10, %cst_270 {dimension_numbers = #tpu.dot_dimension_numbers<[1], [0], [0], [1], [0, 0, 1, 1], [], []>} : vector<2x32xf32>, vector<32x32xf32>, vector<2x32xf32> -> vector<2x32xf32>
    %443 = arith.addf %441, %442 : vector<2x32xf32>
    %444 = math.absf %443 : vector<2x32xf32>
    %cst_271 = arith.constant 0.000000e+00 : f32
    %445 = vector.broadcast %cst_271 : f32 to vector<2x32xf32>
    %446 = arith.subf %445, %444 : vector<2x32xf32>
    %447 = math.exp %446 : vector<2x32xf32>
    %cst_272 = arith.constant 0.000000e+00 : f32
    %448 = vector.broadcast %cst_272 : f32 to vector<2x32xf32>
    %449 = arith.cmpf oge, %443, %448 : vector<2x32xf32>
    %cst_273 = arith.constant 1.000000e+00 : f32
    %450 = vector.broadcast %cst_273 : f32 to vector<2x32xf32>
    %451 = arith.select %449, %450, %447 : vector<2x32xi1>, vector<2x32xf32>
    %cst_274 = arith.constant 1.000000e+00 : f32
    %452 = vector.broadcast %cst_274 : f32 to vector<2x32xf32>
    %453 = arith.addf %452, %447 : vector<2x32xf32>
    %454 = arith.divf %451, %453 : vector<2x32xf32>
    %455 = arith.mulf %434, %401 : vector<2x32xf32>
    %456 = arith.mulf %419, %439 : vector<2x32xf32>
    %457 = arith.addf %455, %456 : vector<2x32xf32>
    %458 = math.tanh %457 : vector<2x32xf32>
    %459 = arith.mulf %454, %458 : vector<2x32xf32>
    %c14 = arith.constant 14 : index
    %c0_275 = arith.constant 0 : index
    %460 = vector.load %arg14[%c14, %c0_275] : memref<16x32xf32, #tpu.memory_space<vmem>>, vector<2x32xf32>
    tpu.vector_store %arg14[%c14, %c0_275], %459 {strides = array<i32>} : memref<16x32xf32, #tpu.memory_space<vmem>>, vector<2x32xf32>,
    %c0_276 = arith.constant 0 : index
    %c0_277 = arith.constant 0 : index
    %461 = vector.load %arg12[%c0_276, %c0_277] : memref<2x32xf32, #tpu.memory_space<vmem>>, vector<2x32xf32>
    tpu.vector_store %arg12[%c0_276, %c0_277], %459 {strides = array<i32>} : memref<2x32xf32, #tpu.memory_space<vmem>>, vector<2x32xf32>,
    %c0_278 = arith.constant 0 : index
    %c0_279 = arith.constant 0 : index
    %462 = vector.load %arg13[%c0_278, %c0_279] : memref<2x32xf32, #tpu.memory_space<vmem>>, vector<2x32xf32>
    tpu.vector_store %arg13[%c0_278, %c0_279], %457 {strides = array<i32>} : memref<2x32xf32, #tpu.memory_space<vmem>>, vector<2x32xf32>,
    %c0_280 = arith.constant 0 : index
    %c0_281 = arith.constant 0 : index
    %463 = vector.load %arg14[%c0_280, %c0_281] : memref<16x32xf32, #tpu.memory_space<vmem>>, vector<16x32xf32>
    %c0_282 = arith.constant 0 : index
    %c0_283 = arith.constant 0 : index
    %464 = vector.load %arg2[%c0_282, %c0_283] : memref<16x4xf32, #tpu.memory_space<vmem>>, vector<16x4xf32>
    %c0_284 = arith.constant 0 : index
    %c0_285 = arith.constant 0 : index
    %465 = vector.load %arg4[%c0_284, %c0_285] : memref<32x32xf32, #tpu.memory_space<vmem>>, vector<32x32xf32>
    %cst_286 = arith.constant dense<0.000000e+00> : vector<16x32xf32>
    %466 = tpu.matmul %463, %465, %cst_286 {dimension_numbers = #tpu.dot_dimension_numbers<[1], [0], [0], [1], [0, 0, 1, 1], [], []>} : vector<16x32xf32>, vector<32x32xf32>, vector<16x32xf32> -> vector<16x32xf32>
    %c0_287 = arith.constant 0 : index
    %c0_288 = arith.constant 0 : index
    %467 = vector.load %arg5[%c0_287, %c0_288] : memref<4x32xf32, #tpu.memory_space<vmem>>, vector<4x32xf32>
    %cst_289 = arith.constant dense<0.000000e+00> : vector<16x32xf32>
    %468 = tpu.matmul %464, %467, %cst_289 {dimension_numbers = #tpu.dot_dimension_numbers<[1], [0], [0], [1], [0, 0, 1, 1], [], []>} : vector<16x4xf32>, vector<4x32xf32>, vector<16x32xf32> -> vector<16x32xf32>
    %469 = arith.addf %466, %468 : vector<16x32xf32>
    %c0_290 = arith.constant 0 : index
    %c0_291 = arith.constant 0 : index
    %470 = vector.load %arg6[%c0_290, %c0_291] : memref<1x32xf32, #tpu.memory_space<vmem>>, vector<1x32xf32>
    %471 = vector.broadcast %470 : vector<1x32xf32> to vector<16x32xf32>
    %472 = arith.addf %469, %471 : vector<16x32xf32>
    %cst_292 = arith.constant 0.000000e+00 : f32
    %473 = vector.broadcast %cst_292 : f32 to vector<16x32xf32>
    %474 = arith.cmpf oge, %472, %473 : vector<16x32xf32>
    %cst_293 = arith.constant 0.00999999977 : f32
    %475 = vector.broadcast %cst_293 : f32 to vector<16x32xf32>
    %476 = arith.mulf %475, %472 : vector<16x32xf32>
    %477 = arith.select %474, %472, %476 : vector<16x32xi1>, vector<16x32xf32>
    %c0_294 = arith.constant 0 : index
    %c0_295 = arith.constant 0 : index
    %478 = vector.load %arg7[%c0_294, %c0_295] : memref<32x32xf32, #tpu.memory_space<vmem>>, vector<32x32xf32>
    %cst_296 = arith.constant dense<0.000000e+00> : vector<16x32xf32>
    %479 = tpu.matmul %477, %478, %cst_296 {dimension_numbers = #tpu.dot_dimension_numbers<[1], [0], [0], [1], [0, 0, 1, 1], [], []>} : vector<16x32xf32>, vector<32x32xf32>, vector<16x32xf32> -> vector<16x32xf32>
    %c0_297 = arith.constant 0 : index
    %c0_298 = arith.constant 0 : index
    %480 = vector.load %arg8[%c0_297, %c0_298] : memref<1x32xf32, #tpu.memory_space<vmem>>, vector<1x32xf32>
    %481 = vector.broadcast %480 : vector<1x32xf32> to vector<16x32xf32>
    %482 = arith.addf %479, %481 : vector<16x32xf32>
    %cst_299 = arith.constant 0.000000e+00 : f32
    %483 = vector.broadcast %cst_299 : f32 to vector<16x32xf32>
    %484 = arith.cmpf oge, %482, %483 : vector<16x32xf32>
    %cst_300 = arith.constant 0.00999999977 : f32
    %485 = vector.broadcast %cst_300 : f32 to vector<16x32xf32>
    %486 = arith.mulf %485, %482 : vector<16x32xf32>
    %487 = arith.select %484, %482, %486 : vector<16x32xi1>, vector<16x32xf32>
    %488 = arith.addf %487, %477 : vector<16x32xf32>
    %c0_301 = arith.constant 0 : index
    %c0_302 = arith.constant 0 : index
    %489 = vector.load %arg9[%c0_301, %c0_302] : memref<32x1xf32, #tpu.memory_space<vmem>>, vector<32x1xf32>
    %cst_303 = arith.constant dense<0.000000e+00> : vector<16x1xf32>
    %490 = tpu.matmul %488, %489, %cst_303 {dimension_numbers = #tpu.dot_dimension_numbers<[1], [0], [0], [1], [0, 0, 1, 1], [], []>} : vector<16x32xf32>, vector<32x1xf32>, vector<16x1xf32> -> vector<16x1xf32>
    %c0_304 = arith.constant 0 : index
    %491 = memref.load %arg10[%c0_304] : memref<3xf32, #tpu.memory_space<smem>>
    %492 = vector.broadcast %491 : f32 to vector<16x1xf32>
    %493 = arith.addf %490, %492 : vector<16x1xf32>
    %cst_305 = arith.constant 0.000000e+00 : f32
    %494 = vector.broadcast %cst_305 : f32 to vector<16x1xf32>
    %495 = arith.cmpf oge, %493, %494 : vector<16x1xf32>
    %cst_306 = arith.constant 0.00999999977 : f32
    %496 = vector.broadcast %cst_306 : f32 to vector<16x1xf32>
    %497 = arith.mulf %496, %493 : vector<16x1xf32>
    %498 = arith.select %495, %493, %497 : vector<16x1xi1>, vector<16x1xf32>
    %c1_307 = arith.constant 1 : index
    %499 = memref.load %arg10[%c1_307] : memref<3xf32, #tpu.memory_space<smem>>
    %500 = vector.broadcast %499 : f32 to vector<16x1xf32>
    %501 = arith.mulf %500, %498 : vector<16x1xf32>
    %c2_308 = arith.constant 2 : index
    %502 = memref.load %arg10[%c2_308] : memref<3xf32, #tpu.memory_space<smem>>
    %503 = vector.broadcast %502 : f32 to vector<16x1xf32>
    %504 = arith.addf %501, %503 : vector<16x1xf32>
    %c0_309 = arith.constant 0 : index
    %c0_310 = arith.constant 0 : index
    %505 = vector.load %arg11[%c0_309, %c0_310] : memref<16x1xf32, #tpu.memory_space<vmem>>, vector<16x1xf32>
    tpu.vector_store %arg11[%c0_309, %c0_310], %504 {strides = array<i32>} : memref<16x1xf32, #tpu.memory_space<vmem>>, vector<16x1xf32>,
    return
  }
  func.func @transform_0(%arg0: i32) -> (i32, i32, i32, i32) {
    %c0_i32 = arith.constant 0 : i32
    %c0_i32_0 = arith.constant 0 : i32
    %c0_i32_1 = arith.constant 0 : i32
    %c0_i32_2 = arith.constant 0 : i32
    return %arg0, %c0_i32, %c0_i32_0, %c0_i32_1 : i32, i32, i32, i32
  }
  func.func @transform_1(%arg0: i32) -> (i32, i32) {
    %c0_i32 = arith.constant 0 : i32
    %c0_i32_0 = arith.constant 0 : i32
    return %arg0, %c0_i32 : i32, i32
  }
  func.func @transform_2(%arg0: i32) -> (i32, i32, i32) {
    %c0_i32 = arith.constant 0 : i32
    %c0_i32_0 = arith.constant 0 : i32
    %c0_i32_1 = arith.constant 0 : i32
    %c0_i32_2 = arith.constant 0 : i32
    return %c0_i32, %c0_i32_0, %c0_i32_1 : i32, i32, i32
  }
  func.func @transform_3(%arg0: i32) -> (i32, i32) {
    %c0_i32 = arith.constant 0 : i32
    %c0_i32_0 = arith.constant 0 : i32
    %c0_i32_1 = arith.constant 0 : i32
    return %c0_i32, %c0_i32_0 : i32, i32
  }
  func.func @transform_4(%arg0: i32) -> (i32, i32) {
    %c0_i32 = arith.constant 0 : i32
    %c0_i32_0 = arith.constant 0 : i32
    %c0_i32_1 = arith.constant 0 : i32
    return %c0_i32, %c0_i32_0 : i32, i32
  }
  func.func @transform_5(%arg0: i32) -> (i32, i32) {
    %c0_i32 = arith.constant 0 : i32
    %c0_i32_0 = arith.constant 0 : i32
    %c0_i32_1 = arith.constant 0 : i32
    return %c0_i32, %c0_i32_0 : i32, i32
  }
  func.func @transform_6(%arg0: i32) -> (i32, i32) {
    %c0_i32 = arith.constant 0 : i32
    %c0_i32_0 = arith.constant 0 : i32
    %c0_i32_1 = arith.constant 0 : i32
    return %c0_i32, %c0_i32_0 : i32, i32
  }
  func.func @transform_7(%arg0: i32) -> (i32, i32) {
    %c0_i32 = arith.constant 0 : i32
    %c0_i32_0 = arith.constant 0 : i32
    %c0_i32_1 = arith.constant 0 : i32
    return %c0_i32, %c0_i32_0 : i32, i32
  }
  func.func @transform_8(%arg0: i32) -> (i32, i32) {
    %c0_i32 = arith.constant 0 : i32
    %c0_i32_0 = arith.constant 0 : i32
    %c0_i32_1 = arith.constant 0 : i32
    return %c0_i32, %c0_i32_0 : i32, i32
  }
  func.func @transform_9(%arg0: i32) -> i32 {
    %c0_i32 = arith.constant 0 : i32
    %c0_i32_0 = arith.constant 0 : i32
    return %c0_i32 : i32
  }
  func.func @transform_10(%arg0: i32) -> (i32, i32) {
    %c0_i32 = arith.constant 0 : i32
    %c0_i32_0 = arith.constant 0 : i32
    return %arg0, %c0_i32 : i32, i32
  }
}

</mosaic_0001>

<bundles_post_ra>
// kernel: spwrnn_wo_l_forward.1
= control target key start
LH: loop header
LB: loop body
LE: loop exit
PB: predicated region body
PF: predicated region fallthrough
CT: control target
= control target key end

     0   :  { %15 = vsyncpa [#allocation6], 0  ;;  %s4673_s13 = smov 0   ;;  %s5137_s0 = inlined_call_operand.vmem [shape: f32[16,4,2,32], index: 0, kind: input, shape index: {}]   ;;  %s5138_s1 = inlined_call_operand.vmem [shape: f32[32,4], index: 1, kind: input, shape index: {}]   ;;  %s5139_s2 = inlined_call_operand.vmem [shape: f32[4,32,32], index: 2, kind: input, shape index: {}]   ;;  %s5140_s3 = inlined_call_operand.vmem [shape: f32[32,32], index: 3, kind: input, shape index: {}]   ;;  %s5141_s4 = inlined_call_operand.vmem [shape: f32[4,32], index: 4, kind: input, shape index: {}]   ;;  %s5142_s5 = inlined_call_operand.vmem [shape: f32[1,32], index: 5, kind: input, shape index: {}]   ;;  %s5143_s6 = inlined_call_operand.vmem [shape: f32[32,32], index: 6, kind: input, shape index: {}]   ;;  %s5144_s7 = inlined_call_operand.vmem [shape: f32[1,32], index: 7, kind: input, shape index: {}]   ;;  %s5145_s8 = inlined_call_operand.vmem [shape: f32[32,1], index: 8, kind: input, shape index: {}]   ;;  %s5146_s9 = inlined_call_operand.vmem [shape: f32[3], index: 9, kind: input, shape index: {}]   ;;  %s5147_s10 = inlined_call_operand.vmem [shape: f32[32,1], index: 10, kind: output, shape index: {}]  }
   0x1 LB: > { %s4679_s14 = sadd.s32 4294967295, %s4611_s13   ;;  %p3542_p0 = scmp.ge.s32.totalorder %s4611_s13, 1  ;;  %s4611_s13 = sphi %s4673_s13, %s21_s13  }
   0x2   : > { %p272_p1 = scmp.lt.s32.totalorder %s4611_s13, 3  ;;  %s306_s17 = sshll.u32 %s5146_s9, 4  ;;  %s307_s17 = int_to_ptr.vmem [resolvable:$true] %s306_s17 }
   0x3   : > { %p4443_p4 = scmp.eq.s32.totalorder %s4679_s14, 0  ;;  %s4586_s19 = scalar_lea.vmem %s307_s17, 16 }
   0x4   : > { %p4687_p3 = pnand %p3542_p0, %p272_p1  ;;  %p4587_p7 = scmp.ne.s32.totalorder %s307_s17, %s4586_s19 }
   0x5   : > { %p4594_p11 = scmp.lt.s32.totalorder %s307_s17, %s307_s17  ;;  %p4595_p12 = scmp.lt.s32.totalorder %s4586_s19, %s4586_s19 }
   0x6   : > { %p4439_p5 = pneg %p4687_p3 }
   0x7   : > { %p4596_p13 = por %p4595_p12, %p4594_p11 }
   0x8   : > { %p4440_p6 = pnand %p4443_p4, %p4439_p5 }
   0xa   : > { %p4588_p8 = pneg %p4440_p6 }
   0xc   : > { %p4589_p9 = pnand %p4588_p8, %p4587_p7 }
   0xe   : > { %p4590_p10 = pneg %p4589_p9 }
  0x10   : > { %p4597_p2 = pnand %p4596_p13, %p4590_p10 }
  0x12   : > { %4600 = shalt.err (!%p4597_p2)
}
  0x13   : > { %s4613_s20 = smov [#allocation5]   ;;  %338 = sbr.rel (%p4687_p3) target bundleno = 2835 (0xb13), region = 60 }
  0x14   : > { %4442 = dma.vmem_to_smem (!%p4440_p6), %s307_s17, 16, %s4613_s20, [#allocation6]  }
  0x1a   : > { %4606 = dma.done.wait (%p4443_p4), [#allocation6], 16  }
  0x1b   : > { %4608 = vsyncadd (%p4443_p4), [#allocation6], 4294967280 }
  0x1c   : > { %344 = sfence }
  0x1d   : > { %s3547_s21 = sshll.u32 %s4679_s14, 3  ;;  %s3550_s22 = sshll.u32 %s4679_s14, 1 }
  0x1e   : > { %p384_p0 = scmp.lt.s32.totalorder %s3547_s21, 15  ;;  %p391_p1 = scmp.lt.s32.totalorder %s3550_s22, 3 }
  0x1f   : > { %p5149_p2 = scmp.ne.s32.totalorder %s4679_s14, 0 }
  0x20   : > { %s5151_s21 = smov (!%p384_p0, %s3547_s21), 15  ;;  %s5153_s22 = smov (!%p391_p1, %s3550_s22), 3 }
  0x21   : > { %s3645_s23 = sshll.u32 %s5151_s21, 3  ;;  %s3551_s27 = sshll.u32 %s5153_s22, 3  ;;  %vm406_vm0 = vcmask (!%p5149_p2), 254976   ;;  %v4614_v0 = vmov (!%p5149_p2), 0.0  }
  0x22   : > { %s4707_s26 = scalar_lea.vmem %s5137_s0, %s3645_s23  ;;  %s4712_s30 = scalar_lea.vmem %s5138_s1, %s3551_s27  ;;  %407 = vst.msk [vmem:[#allocation2] sm:$0x3] (!%p5149_p2), %vm406_vm0, %v4614_v0  ;;  %408 = vst.msk [vmem:[#allocation3] sm:$0x3] (!%p5149_p2), %vm406_vm0, %v4614_v0 }
  0x23   : > { %s4717_s15 = scalar_lea.vmem %s5147_s10, %s3551_s27  ;;  %405 = sbr.rel (%p5149_p2) target bundleno = 42 (0x2a), region = 68 }
  0x2a PF: > { %v409_v1 = vld [vmem:[%s5139_s2] sm:$0xff]  ;;  %v410_v2 = vld [vmem:[%s5139_s2 + $0x8] sm:$0xff]  ;;  %v4615_v4 = vmov 0.0|0.0   ;;  %v411_v7 = vld [vmem:[%s5139_s2 + $0x10] sm:$0xff]  ;;  %vm4616_vm1 = vmmov 0   ;;  %v4617_v12 = vmov 0.0  }
  0x2b   : > { %v3555_v3 = vld [vmem:[%s5139_s2 + $0x20] sm:$0xff]  ;;  %4217 = vmatprep.subr.bf16.mxu0 %v4615_v4  ;;  %4223 = vmatprep.subr.bf16.mxu1 %v4615_v4  ;;  %v4732_v5 = vpack.c.bf16 %v410_v2, %v409_v1  ;;  %v3556_v6 = vld [vmem:[%s5139_s2 + $0x28] sm:$0xff]  ;;  %v412_v8 = vld [vmem:[%s5139_s2 + $0x18] sm:$0xff]  ;;  %vm431_vm2 = vcmask 261120   ;;  %vm758_vm6 = vcmask 254976   ;;  %s3360_s25 = sld [smem:[#allocation5]] }
  0x2c   : > { %v4743_v9 = vpack.c.bf16 %v3556_v6, %v3555_v3  ;;  %v3557_v10 = vld [vmem:[%s5139_s2 + $0x30] sm:$0xff]  ;;  %v3558_v11 = vld [vmem:[%s5139_s2 + $0x38] sm:$0xff]  ;;  %3835 = vmatprep.mubr.msk.f32.mxu0 %vm4616_vm1, %v4617_v12  ;;  %3846 = vmatprep.mubr.msk.f32.mxu1 %vm4616_vm1, %v4617_v12  ;;  %v4756_v13 = vpack.c.bf16 %v412_v8, %v411_v7  ;;  %v3559_v15 = vld [vmem:[%s5139_s2 + $0x40] sm:$0xff]  ;;  %s3641_s27 = sld [smem:[#allocation5 + $0x1]]  ;;  %s3642_s28 = sld [smem:[#allocation5 + $0x2]] }
  0x2d   : > { %4219 = vmatpush3.bf16.msra.mxu0 %v4732_v5  ;;  %v4760_v14 = vpack.c.bf16 %v3558_v11, %v3557_v10  ;;  %v3560_v16 = vld [vmem:[%s5139_s2 + $0x48] sm:$0xff]  ;;  %v3563_v17 = vld [vmem:[%s5139_s2 + $0x60] sm:$0xff]  ;;  %v3561_v22 = vld [vmem:[%s5139_s2 + $0x50] sm:$0xff] }
  0x2e   : > { %4225 = vmatpush3.bf16.msra.mxu1 %v4743_v9  ;;  %4220 = vmatprep.subr.bf16.mxu0 %v4615_v4  ;;  %v3564_v18 = vld [vmem:[%s5139_s2 + $0x68] sm:$0xff]  ;;  %v428_v19 = vld [vmem:[#allocation2] sm:$0x3]  ;;  %v4776_v20 = vpack.c.bf16 %v3560_v16, %v3559_v15  ;;  %v3562_v23 = vld [vmem:[%s5139_s2 + $0x58] sm:$0xff] }
  0x2f   : > { %4226 = vmatprep.subr.bf16.mxu1 %v4615_v4  ;;  %v4779_v21 = vpack.c.bf16 %v3564_v18, %v3563_v17  ;;  %v3565_v24 = vld [vmem:[%s5139_s2 + $0x70] sm:$0xff]  ;;  %v3566_v25 = vld [vmem:[%s5139_s2 + $0x78] sm:$0xff]  ;;  %v4798_v26 = vpack.c.bf16 %v3562_v23, %v3561_v22  ;;  %v430_v28 = vld [vmem:[%s4707_s26] sm:$0x3] }
  0x30   : > { %v4801_v27 = vpack.c.bf16 %v3566_v25, %v3565_v24  ;;  %v3568_v29 = vld [vmem:[%s4707_s26 + $0x2] sm:$0x3]  ;;  %v3572_v41 = vld [vmem:[%s4707_s26 + $0x6] sm:$0x3]  ;;  %v3570_v50 = vld [vmem:[%s4707_s26 + $0x4] sm:$0x3] }
  0x31   : > { %4222 = vmatpush3.bf16.msra.mxu0 %v4756_v13  ;;  %v429_v0 = vld [vmem:[#allocation3] sm:$0x3]  ;;  %v3574_v17 = vld [vmem:[%s4707_s26 + $0x8] sm:$0x3]  ;;  %v3576_v18 = vld [vmem:[%s4707_s26 + $0xa] sm:$0x3] }
  0x32   : > { %4228 = vmatpush3.bf16.msra.mxu1 %v4760_v14  ;;  %4229 = vmatprep.subr.bf16.mxu0 %v4615_v4 }
  0x33   : > { %4235 = vmatprep.subr.bf16.mxu1 %v4615_v4 }
  0x34   : > { %3836 = vmatmul.mubr.msk.f32.vlgmr.msra.gmra.mrb[0].mxu0 %vm431_vm2, %v428_v19 }
  0x35   : > { %3847 = vmatmul.mubr.msk.f32.vlgmr.msra.gmra.mrb[0].mxu1 %vm431_vm2, %v428_v19  ;;  %4231 = vmatpush3.bf16.msra.mxu0 %v4776_v20 }
  0x36   : > { %4237 = vmatpush3.bf16.msra.mxu1 %v4779_v21  ;;  %3868 = vmatprep.mubr.msk.f32.mxu1 %vm4616_vm1, %v4617_v12 }
  0x37   : > { %4238 = vmatprep.subr.bf16.mxu1 %v4615_v4  ;;  %4232 = vmatprep.subr.bf16.mxu0 %v4615_v4 }
  0x38   : > { %3857 = vmatprep.mubr.msk.f32.mxu0 %vm4616_vm1, %v4617_v12 }
  0x39   : > { %4234 = vmatpush3.bf16.msra.mxu0 %v4798_v26 }
  0x3a   : > { %4240 = vmatpush3.bf16.msra.mxu1 %v4801_v27  ;;  %4241 = vmatprep.subr.bf16.mxu0 %v4615_v4 }
  0x3b   : > { %4247 = vmatprep.subr.bf16.mxu1 %v4615_v4 }
  0x3c   : > { %3858 = vmatmul.mubr.msk.f32.vlgmr.msra.gmra.mrb[2].mxu0 %vm431_vm2, %v428_v19 }
  0x3d   : > { %3869 = vmatmul.mubr.msk.f32.vlgmr.msra.gmra.mrb[2].mxu1 %vm431_vm2, %v428_v19  ;;  %4243 = vmatpush3.bf16.msra.mxu0 %v4732_v5 }
  0x3e   : > { %4249 = vmatpush3.bf16.msra.mxu1 %v4743_v9  ;;  %4244 = vmatprep.subr.bf16.mxu0 %v4615_v4 }
  0x3f   : > { %4250 = vmatprep.subr.bf16.mxu1 %v4615_v4  ;;  %3879 = vmatprep.mubr.msk.f32.mxu0 %vm4616_vm1, %v4617_v12 }
  0x40   : > { %3890 = vmatprep.mubr.msk.f32.mxu1 %vm4616_vm1, %v4617_v12 }
  0x41   : > { %4246 = vmatpush3.bf16.msra.mxu0 %v4756_v13 }
  0x42   : > { %4252 = vmatpush3.bf16.msra.mxu1 %v4760_v14  ;;  %4253 = vmatprep.subr.bf16.mxu0 %v4615_v4 }
  0x43   : > { %4259 = vmatprep.subr.bf16.mxu1 %v4615_v4 }
 0x107   : > { %v501_v30 = vpop.f32.mrb[0].mxu0 }
 0x108   : > { %v505_v31 = vadd.f32 %v501_v30, %v430_v28  ;;  %v583_v32 = vpop.f32.mrb[0].mxu1  ;;  %v3837_v33 = vpop.f32.mrb[1].mxu0 }
 0x109   : > { %v587_v34 = vadd.f32 %v3568_v29, %v583_v32  ;;  %v3848_v35 = vpop.f32.mrb[1].mxu1  ;;  %v3580_v33 = vld [vmem:[%s4707_s26 + $0xe] sm:$0x3] }
 0x10a   : > { %v506_v36 = vand.u32 2147483647, %v505_v31  ;;  %vm510_vm3 = vcmp.ge.f32.partialorder %v505_v31, 0.0 }
 0x10b   : > { %v588_v37 = vand.u32 2147483647, %v587_v34  ;;  %vm592_vm4 = vcmp.ge.f32.partialorder %v587_v34, 0.0 }
 0x10c   : > { %v507_v38 = vsub.f32 0.0, %v506_v36 }
 0x10d   : > { %v589_v39 = vsub.f32 0.0, %v588_v37 }
 0x10e   : > { %v508_v40 = vmul.f32 1.442695, %v507_v38 }
 0x10f   : > { %v590_v42 = vmul.f32 1.442695, %v589_v39  ;;  %v665_v43 = vpop.f32.mrb[2].mxu0 }
 0x110   : > { %4458 = vpow2.f32 %v508_v40  ;;  %v739_v44 = vpop.f32.mrb[2].mxu1  ;;  %v3859_v45 = vpop.f32.mrb[3].mxu0  ;;  %v669_v52 = vadd.f32 %v3570_v50, %v665_v43 }
 0x111   : > { %4460 = vpow2.f32 %v590_v42  ;;  %v743_v46 = vadd.f32 %v3572_v41, %v739_v44  ;;  %v3870_v47 = vpop.f32.mrb[3].mxu1  ;;  %v3578_v44 = vld [vmem:[%s4707_s26 + $0xc] sm:$0x3] }
 0x113   : > { %v744_v48 = vand.u32 2147483647, %v743_v46  ;;  %vm748_vm5 = vcmp.ge.f32.partialorder %v743_v46, 0.0 }
 0x115   : > { %v745_v49 = vsub.f32 0.0, %v744_v48 }
 0x117   : > { %v746_v51 = vmul.f32 1.442695, %v745_v49 }
 0x119   : > { %4462 = vpow2.f32 %v746_v51 }
 0x11a   : > { %v4459_v53 = vpop.eup %4458  ;;  %4464 = vtanh.f32 %v669_v52 }
 0x11b   : > { %v4461_v54 = vpop.eup %4460  ;;  %v512_v55 = vadd.f32 1.0, %v4459_v53  ;;  %v511_v60 = vsel %vm510_vm3, 1.0, %v4459_v53 }
 0x11c   : > { %v594_v56 = vadd.f32 1.0, %v4461_v54  ;;  %v593_v1 = vsel %vm592_vm4, 1.0, %v4461_v54 }
 0x11d   : > { %4466 = vrcp.f32 %v512_v55 }
 0x11e   : > { %4468 = vrcp.f32 %v594_v56 }
 0x123   : > { %v4463_v57 = vpop.eup %4462 }
 0x124   : > { %v4465_v58 = vpop.eup %4464  ;;  %v750_v61 = vadd.f32 1.0, %v4463_v57  ;;  %v749_v10 = vsel %vm748_vm5, 1.0, %v4463_v57 }
 0x126   : > { %4470 = vrcp.f32 %v750_v61 }
 0x127   : > { %v4467_v59 = vpop.eup %4466 }
 0x128   : > { %v4469_v62 = vpop.eup %4468  ;;  %v514_v63 = vmul.f32 %v4467_v59, %v511_v60 }
 0x129   : > { %v596_v2 = vmul.f32 %v4469_v62, %v593_v1 }
 0x12a   : > { %v754_v3 = vmul.f32 %v4465_v58, %v514_v63 }
 0x12b   : > { %v753_v6 = vmul.f32 %v596_v2, %v429_v0 }
 0x12d   : > { %v4831_v7 = vadd.f32 %v754_v3, %v753_v6  ;;  %v3582_v3 = vld [vmem:[%s4707_s26 + $0x10] sm:$0x3]  ;;  %v3584_v6 = vld [vmem:[%s4707_s26 + $0x12] sm:$0x3] }
 0x12f   : > { %4472 = vtanh.f32 %v4831_v7 }
 0x130   : > { %v4471_v8 = vpop.eup %4470 }
 0x131   : > { %v752_v11 = vmul.f32 %v4471_v8, %v749_v10 }
 0x139   : > { %v4473_v15 = vpop.eup %4472 }
 0x13a   : > { %v757_v16 = vmul.f32 %v4473_v15, %v752_v11 }
 0x13c   : > { %759 = vst.msk [vmem:[#allocation4] sm:$0x3] %vm758_vm6, %v757_v16  ;;  %3880 = vmatmul.mubr.msk.f32.vlgmr.msra.gmra.mrb[4].mxu0 %vm431_vm2, %v757_v16  ;;  %3891 = vmatmul.mubr.msk.f32.vlgmr.msra.gmra.mrb[4].mxu1 %vm431_vm2, %v757_v16 }
 0x13d   : > { %4255 = vmatpush3.bf16.msra.mxu0 %v4776_v20  ;;  %4261 = vmatpush3.bf16.msra.mxu1 %v4779_v21 }
 0x13e   : > { %4256 = vmatprep.subr.bf16.mxu0 %v4615_v4  ;;  %4262 = vmatprep.subr.bf16.mxu1 %v4615_v4 }
 0x13f   : > { %3901 = vmatprep.mubr.msk.f32.mxu0 %vm4616_vm1, %v4617_v12  ;;  %3912 = vmatprep.mubr.msk.f32.mxu1 %vm4616_vm1, %v4617_v12 }
 0x141   : > { %4258 = vmatpush3.bf16.msra.mxu0 %v4798_v26  ;;  %4264 = vmatpush3.bf16.msra.mxu1 %v4801_v27 }
 0x142   : > { %4265 = vmatprep.subr.bf16.mxu0 %v4615_v4  ;;  %4271 = vmatprep.subr.bf16.mxu1 %v4615_v4 }
 0x144   : > { %3902 = vmatmul.mubr.msk.f32.vlgmr.msra.gmra.mrb[6].mxu0 %vm431_vm2, %v757_v16  ;;  %3913 = vmatmul.mubr.msk.f32.vlgmr.msra.gmra.mrb[6].mxu1 %vm431_vm2, %v757_v16 }
 0x145   : > { %4267 = vmatpush3.bf16.msra.mxu0 %v4732_v5  ;;  %4273 = vmatpush3.bf16.msra.mxu1 %v4743_v9 }
 0x146   : > { %4268 = vmatprep.subr.bf16.mxu0 %v4615_v4  ;;  %4274 = vmatprep.subr.bf16.mxu1 %v4615_v4 }
 0x147   : > { %3923 = vmatprep.mubr.msk.f32.mxu0 %vm4616_vm1, %v4617_v12  ;;  %3934 = vmatprep.mubr.msk.f32.mxu1 %vm4616_vm1, %v4617_v12 }
 0x149   : > { %4270 = vmatpush3.bf16.msra.mxu0 %v4756_v13  ;;  %4276 = vmatpush3.bf16.msra.mxu1 %v4760_v14 }
 0x14a   : > { %4277 = vmatprep.subr.bf16.mxu0 %v4615_v4  ;;  %4283 = vmatprep.subr.bf16.mxu1 %v4615_v4 }
 0x20f   : > { %v831_v19 = vpop.f32.mrb[4].mxu0  ;;  %v913_v22 = vpop.f32.mrb[4].mxu1 }
 0x210   : > { %v835_v23 = vadd.f32 %v3574_v17, %v831_v19  ;;  %v917_v24 = vadd.f32 %v3576_v18, %v913_v22  ;;  %v3881_v25 = vpop.f32.mrb[5].mxu0  ;;  %v3892_v28 = vpop.f32.mrb[5].mxu1 }
 0x212   : > { %v836_v29 = vand.u32 2147483647, %v835_v23  ;;  %v918_v30 = vand.u32 2147483647, %v917_v24  ;;  %vm840_vm7 = vcmp.ge.f32.partialorder %v835_v23, 0.0  ;;  %vm922_vm8 = vcmp.ge.f32.partialorder %v917_v24, 0.0 }
 0x213   : > { %v3588_v23 = vld [vmem:[%s4707_s26 + $0x16] sm:$0x3] }
 0x214   : > { %v837_v31 = vsub.f32 0.0, %v836_v29  ;;  %v919_v32 = vsub.f32 0.0, %v918_v30 }
 0x216   : > { %v838_v34 = vmul.f32 1.442695, %v837_v31  ;;  %v920_v35 = vmul.f32 1.442695, %v919_v32 }
 0x217   : > { %v995_v36 = vpop.f32.mrb[6].mxu0  ;;  %v1069_v37 = vpop.f32.mrb[6].mxu1 }
 0x218   : > { %4474 = vpow2.f32 %v838_v34  ;;  %v1073_v38 = vadd.f32 %v3580_v33, %v1069_v37  ;;  %v3903_v39 = vpop.f32.mrb[7].mxu0  ;;  %v3914_v40 = vpop.f32.mrb[7].mxu1  ;;  %v999_v48 = vadd.f32 %v3578_v44, %v995_v36  ;;  %v3586_v36 = vld [vmem:[%s4707_s26 + $0x14] sm:$0x3] }
 0x219   : > { %4476 = vpow2.f32 %v920_v35 }
 0x21a   : > { %v1074_v41 = vand.u32 2147483647, %v1073_v38  ;;  %vm1078_vm9 = vcmp.ge.f32.partialorder %v1073_v38, 0.0 }
 0x21c   : > { %v1075_v42 = vsub.f32 0.0, %v1074_v41 }
 0x21e   : > { %v1076_v43 = vmul.f32 1.442695, %v1075_v42 }
 0x220   : > { %4478 = vpow2.f32 %v1076_v43 }
 0x222   : > { %v4475_v45 = vpop.eup %4474 }
 0x223   : > { %v4477_v46 = vpop.eup %4476  ;;  %v842_v47 = vadd.f32 1.0, %v4475_v45  ;;  %v841_v52 = vsel %vm840_vm7, 1.0, %v4475_v45 }
 0x224   : > { %v924_v49 = vadd.f32 1.0, %v4477_v46  ;;  %v923_v56 = vsel %vm922_vm8, 1.0, %v4477_v46 }
 0x225   : > { %4480 = vrcp.f32 %v842_v47 }
 0x226   : > { %4482 = vrcp.f32 %v924_v49 }
 0x227   : > { %4484 = vtanh.f32 %v999_v48 }
 0x22a   : > { %v4479_v50 = vpop.eup %4478 }
 0x22b   : > { %v1080_v53 = vadd.f32 1.0, %v4479_v50  ;;  %v1079_v63 = vsel %vm1078_vm9, 1.0, %v4479_v50 }
 0x22d   : > { %4486 = vrcp.f32 %v1080_v53 }
 0x22f   : > { %v4481_v51 = vpop.eup %4480 }
 0x230   : > { %v4483_v54 = vpop.eup %4482  ;;  %v844_v55 = vmul.f32 %v4481_v51, %v841_v52 }
 0x231   : > { %v4485_v57 = vpop.eup %4484  ;;  %v926_v58 = vmul.f32 %v4483_v54, %v923_v56 }
 0x232   : > { %v1084_v59 = vmul.f32 %v4485_v57, %v844_v55 }
 0x233   : > { %v1083_v60 = vmul.f32 %v926_v58, %v4831_v7 }
 0x235   : > { %v4868_v61 = vadd.f32 %v1084_v59, %v1083_v60  ;;  %v3590_v59 = vld [vmem:[%s4707_s26 + $0x18] sm:$0x3]  ;;  %v3592_v60 = vld [vmem:[%s4707_s26 + $0x1a] sm:$0x3] }
 0x237   : > { %4488 = vtanh.f32 %v4868_v61  ;;  %v4487_v62 = vpop.eup %4486 }
 0x238   : > { %v1082_v0 = vmul.f32 %v4487_v62, %v1079_v63 }
 0x241   : > { %v4489_v1 = vpop.eup %4488 }
 0x242   : > { %v1087_v2 = vmul.f32 %v4489_v1, %v1082_v0 }
 0x244   : > { %1088 = vst.msk [vmem:[#allocation4 + $0x2] sm:$0x3] %vm758_vm6, %v1087_v2  ;;  %3924 = vmatmul.mubr.msk.f32.vlgmr.msra.gmra.mrb[8].mxu0 %vm431_vm2, %v1087_v2  ;;  %3935 = vmatmul.mubr.msk.f32.vlgmr.msra.gmra.mrb[8].mxu1 %vm431_vm2, %v1087_v2 }
 0x245   : > { %4279 = vmatpush3.bf16.msra.mxu0 %v4776_v20  ;;  %4285 = vmatpush3.bf16.msra.mxu1 %v4779_v21 }
 0x246   : > { %4280 = vmatprep.subr.bf16.mxu0 %v4615_v4  ;;  %4286 = vmatprep.subr.bf16.mxu1 %v4615_v4 }
 0x247   : > { %3945 = vmatprep.mubr.msk.f32.mxu0 %vm4616_vm1, %v4617_v12  ;;  %3956 = vmatprep.mubr.msk.f32.mxu1 %vm4616_vm1, %v4617_v12 }
 0x249   : > { %4282 = vmatpush3.bf16.msra.mxu0 %v4798_v26  ;;  %4288 = vmatpush3.bf16.msra.mxu1 %v4801_v27 }
 0x24a   : > { %4289 = vmatprep.subr.bf16.mxu0 %v4615_v4  ;;  %4295 = vmatprep.subr.bf16.mxu1 %v4615_v4 }
 0x24c   : > { %3946 = vmatmul.mubr.msk.f32.vlgmr.msra.gmra.mrb[10].mxu0 %vm431_vm2, %v1087_v2  ;;  %3957 = vmatmul.mubr.msk.f32.vlgmr.msra.gmra.mrb[10].mxu1 %vm431_vm2, %v1087_v2 }
 0x24d   : > { %4291 = vmatpush3.bf16.msra.mxu0 %v4732_v5  ;;  %4297 = vmatpush3.bf16.msra.mxu1 %v4743_v9 }
 0x24e   : > { %4292 = vmatprep.subr.bf16.mxu0 %v4615_v4  ;;  %4298 = vmatprep.subr.bf16.mxu1 %v4615_v4 }
 0x24f   : > { %3967 = vmatprep.mubr.msk.f32.mxu0 %vm4616_vm1, %v4617_v12  ;;  %3978 = vmatprep.mubr.msk.f32.mxu1 %vm4616_vm1, %v4617_v12 }
 0x251   : > { %4294 = vmatpush3.bf16.msra.mxu0 %v4756_v13  ;;  %4300 = vmatpush3.bf16.msra.mxu1 %v4760_v14 }
 0x252   : > { %4301 = vmatprep.subr.bf16.mxu0 %v4615_v4  ;;  %4307 = vmatprep.subr.bf16.mxu1 %v4615_v4 }
 0x317   : > { %v1160_v7 = vpop.f32.mrb[8].mxu0  ;;  %v1242_v8 = vpop.f32.mrb[8].mxu1 }
 0x318   : > { %v1164_v10 = vadd.f32 %v3582_v3, %v1160_v7  ;;  %v1246_v11 = vadd.f32 %v3584_v6, %v1242_v8  ;;  %v3925_v15 = vpop.f32.mrb[9].mxu0  ;;  %v3936_v16 = vpop.f32.mrb[9].mxu1 }
 0x31a   : > { %v1165_v17 = vand.u32 2147483647, %v1164_v10  ;;  %v1247_v18 = vand.u32 2147483647, %v1246_v11  ;;  %vm1169_vm10 = vcmp.ge.f32.partialorder %v1164_v10, 0.0  ;;  %vm1251_vm11 = vcmp.ge.f32.partialorder %v1246_v11, 0.0 }
 0x31b   : > { %v3596_v10 = vld [vmem:[%s4707_s26 + $0x1e] sm:$0x3] }
 0x31c   : > { %v1166_v19 = vsub.f32 0.0, %v1165_v17  ;;  %v1248_v22 = vsub.f32 0.0, %v1247_v18 }
 0x31e   : > { %v1167_v24 = vmul.f32 1.442695, %v1166_v19  ;;  %v1249_v25 = vmul.f32 1.442695, %v1248_v22 }
 0x31f   : > { %v1324_v28 = vpop.f32.mrb[10].mxu0  ;;  %v1398_v29 = vpop.f32.mrb[10].mxu1 }
 0x320   : > { %4490 = vpow2.f32 %v1167_v24  ;;  %v1402_v30 = vadd.f32 %v3588_v23, %v1398_v29  ;;  %v3947_v31 = vpop.f32.mrb[11].mxu0  ;;  %v3958_v32 = vpop.f32.mrb[11].mxu1  ;;  %v1328_v40 = vadd.f32 %v3586_v36, %v1324_v28  ;;  %v3594_v28 = vld [vmem:[%s4707_s26 + $0x1c] sm:$0x3] }
 0x321   : > { %4492 = vpow2.f32 %v1249_v25 }
 0x322   : > { %v1403_v33 = vand.u32 2147483647, %v1402_v30  ;;  %vm1407_vm12 = vcmp.ge.f32.partialorder %v1402_v30, 0.0 }
 0x324   : > { %v1404_v34 = vsub.f32 0.0, %v1403_v33 }
 0x326   : > { %v1405_v35 = vmul.f32 1.442695, %v1404_v34 }
 0x328   : > { %4494 = vpow2.f32 %v1405_v35 }
 0x32a   : > { %v4491_v37 = vpop.eup %4490 }
 0x32b   : > { %v4493_v38 = vpop.eup %4492  ;;  %v1171_v39 = vadd.f32 1.0, %v4491_v37  ;;  %v1170_v44 = vsel %vm1169_vm10, 1.0, %v4491_v37 }
 0x32c   : > { %v1253_v41 = vadd.f32 1.0, %v4493_v38  ;;  %v1252_v48 = vsel %vm1251_vm11, 1.0, %v4493_v38 }
 0x32d   : > { %4496 = vrcp.f32 %v1171_v39 }
 0x32e   : > { %4498 = vrcp.f32 %v1253_v41 }
 0x32f   : > { %4500 = vtanh.f32 %v1328_v40 }
 0x332   : > { %v4495_v42 = vpop.eup %4494 }
 0x333   : > { %v1409_v45 = vadd.f32 1.0, %v4495_v42  ;;  %v1408_v55 = vsel %vm1407_vm12, 1.0, %v4495_v42  ;;  %vm3081_vm12 = vcmask 1043456  }
 0x335   : > { %4502 = vrcp.f32 %v1409_v45 }
 0x337   : > { %v4497_v43 = vpop.eup %4496 }
 0x338   : > { %v4499_v46 = vpop.eup %4498  ;;  %v1173_v47 = vmul.f32 %v4497_v43, %v1170_v44 }
 0x339   : > { %v4501_v49 = vpop.eup %4500  ;;  %v1255_v50 = vmul.f32 %v4499_v46, %v1252_v48 }
 0x33a   : > { %v1413_v51 = vmul.f32 %v4501_v49, %v1173_v47 }
 0x33b   : > { %v1412_v52 = vmul.f32 %v1255_v50, %v4868_v61 }
 0x33d   : > { %v4905_v53 = vadd.f32 %v1413_v51, %v1412_v52  ;;  %v3598_v51 = vld [vmem:[%s4707_s26 + $0x20] sm:$0x3]  ;;  %v3600_v52 = vld [vmem:[%s4707_s26 + $0x22] sm:$0x3] }
 0x33f   : > { %4504 = vtanh.f32 %v4905_v53  ;;  %v4503_v54 = vpop.eup %4502 }
 0x340   : > { %v1411_v56 = vmul.f32 %v4503_v54, %v1408_v55 }
 0x349   : > { %v4505_v57 = vpop.eup %4504 }
 0x34a   : > { %v1416_v58 = vmul.f32 %v4505_v57, %v1411_v56 }
 0x34c   : > { %1417 = vst.msk [vmem:[#allocation4 + $0x4] sm:$0x3] %vm758_vm6, %v1416_v58  ;;  %3968 = vmatmul.mubr.msk.f32.vlgmr.msra.gmra.mrb[12].mxu0 %vm431_vm2, %v1416_v58  ;;  %3979 = vmatmul.mubr.msk.f32.vlgmr.msra.gmra.mrb[12].mxu1 %vm431_vm2, %v1416_v58 }
 0x34d   : > { %4303 = vmatpush3.bf16.msra.mxu0 %v4776_v20  ;;  %4309 = vmatpush3.bf16.msra.mxu1 %v4779_v21 }
 0x34e   : > { %4304 = vmatprep.subr.bf16.mxu0 %v4615_v4  ;;  %4310 = vmatprep.subr.bf16.mxu1 %v4615_v4 }
 0x34f   : > { %3989 = vmatprep.mubr.msk.f32.mxu0 %vm4616_vm1, %v4617_v12  ;;  %4000 = vmatprep.mubr.msk.f32.mxu1 %vm4616_vm1, %v4617_v12 }
 0x351   : > { %4306 = vmatpush3.bf16.msra.mxu0 %v4798_v26  ;;  %4312 = vmatpush3.bf16.msra.mxu1 %v4801_v27 }
 0x352   : > { %4313 = vmatprep.subr.bf16.mxu0 %v4615_v4  ;;  %4319 = vmatprep.subr.bf16.mxu1 %v4615_v4 }
 0x354   : > { %3990 = vmatmul.mubr.msk.f32.vlgmr.msra.gmra.mrb[14].mxu0 %vm431_vm2, %v1416_v58  ;;  %4001 = vmatmul.mubr.msk.f32.vlgmr.msra.gmra.mrb[14].mxu1 %vm431_vm2, %v1416_v58 }
 0x355   : > { %4315 = vmatpush3.bf16.msra.mxu0 %v4732_v5  ;;  %4321 = vmatpush3.bf16.msra.mxu1 %v4743_v9 }
 0x356   : > { %4316 = vmatprep.subr.bf16.mxu0 %v4615_v4  ;;  %4322 = vmatprep.subr.bf16.mxu1 %v4615_v4 }
 0x357   : > { %4011 = vmatprep.mubr.msk.f32.mxu0 %vm4616_vm1, %v4617_v12  ;;  %4022 = vmatprep.mubr.msk.f32.mxu1 %vm4616_vm1, %v4617_v12 }
 0x359   : > { %4318 = vmatpush3.bf16.msra.mxu0 %v4756_v13  ;;  %4324 = vmatpush3.bf16.msra.mxu1 %v4760_v14 }
 0x35a   : > { %4325 = vmatprep.subr.bf16.mxu0 %v4615_v4  ;;  %4331 = vmatprep.subr.bf16.mxu1 %v4615_v4 }
 0x41f   : > { %v1489_v61 = vpop.f32.mrb[12].mxu0  ;;  %v1571_v62 = vpop.f32.mrb[12].mxu1 }
 0x420   : > { %v1493_v63 = vadd.f32 %v3590_v59, %v1489_v61  ;;  %v1575_v0 = vadd.f32 %v3592_v60, %v1571_v62  ;;  %v3969_v1 = vpop.f32.mrb[13].mxu0  ;;  %v3980_v2 = vpop.f32.mrb[13].mxu1 }
 0x422   : > { %v1494_v3 = vand.u32 2147483647, %v1493_v63  ;;  %v1576_v6 = vand.u32 2147483647, %v1575_v0  ;;  %vm1498_vm13 = vcmp.ge.f32.partialorder %v1493_v63, 0.0  ;;  %vm1580_vm14 = vcmp.ge.f32.partialorder %v1575_v0, 0.0 }
 0x423   : > { %v3604_v63 = vld [vmem:[%s4707_s26 + $0x26] sm:$0x3] }
 0x424   : > { %v1495_v7 = vsub.f32 0.0, %v1494_v3  ;;  %v1577_v8 = vsub.f32 0.0, %v1576_v6 }
 0x426   : > { %v1496_v11 = vmul.f32 1.442695, %v1495_v7  ;;  %v1578_v15 = vmul.f32 1.442695, %v1577_v8 }
 0x427   : > { %v1653_v16 = vpop.f32.mrb[14].mxu0  ;;  %v1727_v17 = vpop.f32.mrb[14].mxu1 }
 0x428   : > { %4506 = vpow2.f32 %v1496_v11  ;;  %v1731_v18 = vadd.f32 %v3596_v10, %v1727_v17  ;;  %v3991_v19 = vpop.f32.mrb[15].mxu0  ;;  %v4002_v22 = vpop.f32.mrb[15].mxu1  ;;  %v1657_v32 = vadd.f32 %v3594_v28, %v1653_v16  ;;  %v3602_v16 = vld [vmem:[%s4707_s26 + $0x24] sm:$0x3] }
 0x429   : > { %4508 = vpow2.f32 %v1578_v15 }
 0x42a   : > { %v1732_v23 = vand.u32 2147483647, %v1731_v18  ;;  %vm1736_vm15 = vcmp.ge.f32.partialorder %v1731_v18, 0.0 }
 0x42c   : > { %v1733_v24 = vsub.f32 0.0, %v1732_v23 }
 0x42e   : > { %v1734_v25 = vmul.f32 1.442695, %v1733_v24 }
 0x430   : > { %4510 = vpow2.f32 %v1734_v25 }
 0x432   : > { %v4507_v29 = vpop.eup %4506 }
 0x433   : > { %v4509_v30 = vpop.eup %4508  ;;  %v1500_v31 = vadd.f32 1.0, %v4507_v29  ;;  %v1499_v36 = vsel %vm1498_vm13, 1.0, %v4507_v29  ;;  %vm3074_vm13 = vcmask 31744  }
 0x434   : > { %v1582_v33 = vadd.f32 1.0, %v4509_v30  ;;  %v1581_v40 = vsel %vm1580_vm14, 1.0, %v4509_v30 }
 0x435   : > { %4512 = vrcp.f32 %v1500_v31 }
 0x436   : > { %4514 = vrcp.f32 %v1582_v33 }
 0x437   : > { %4516 = vtanh.f32 %v1657_v32 }
 0x43a   : > { %v4511_v34 = vpop.eup %4510 }
 0x43b   : > { %v1738_v37 = vadd.f32 1.0, %v4511_v34  ;;  %v1737_v47 = vsel %vm1736_vm15, 1.0, %v4511_v34 }
 0x43d   : > { %4518 = vrcp.f32 %v1738_v37 }
 0x43f   : > { %v4513_v35 = vpop.eup %4512 }
 0x440   : > { %v4515_v38 = vpop.eup %4514  ;;  %v1502_v39 = vmul.f32 %v4513_v35, %v1499_v36 }
 0x441   : > { %v4517_v41 = vpop.eup %4516  ;;  %v1584_v42 = vmul.f32 %v4515_v38, %v1581_v40 }
 0x442   : > { %v1742_v43 = vmul.f32 %v4517_v41, %v1502_v39 }
 0x443   : > { %v1741_v44 = vmul.f32 %v1584_v42, %v4905_v53 }
 0x445   : > { %v4942_v45 = vadd.f32 %v1742_v43, %v1741_v44  ;;  %v3606_v43 = vld [vmem:[%s4707_s26 + $0x28] sm:$0x3]  ;;  %v3608_v44 = vld [vmem:[%s4707_s26 + $0x2a] sm:$0x3] }
 0x447   : > { %4520 = vtanh.f32 %v4942_v45  ;;  %v4519_v46 = vpop.eup %4518 }
 0x448   : > { %v1740_v48 = vmul.f32 %v4519_v46, %v1737_v47 }
 0x451   : > { %v4521_v49 = vpop.eup %4520 }
 0x452   : > { %v1745_v50 = vmul.f32 %v4521_v49, %v1740_v48 }
 0x454   : > { %1746 = vst.msk [vmem:[#allocation4 + $0x6] sm:$0x3] %vm758_vm6, %v1745_v50  ;;  %4012 = vmatmul.mubr.msk.f32.vlgmr.msra.gmra.mrb[16].mxu0 %vm431_vm2, %v1745_v50  ;;  %4023 = vmatmul.mubr.msk.f32.vlgmr.msra.gmra.mrb[16].mxu1 %vm431_vm2, %v1745_v50 }
 0x455   : > { %4327 = vmatpush3.bf16.msra.mxu0 %v4776_v20  ;;  %4333 = vmatpush3.bf16.msra.mxu1 %v4779_v21 }
 0x456   : > { %4328 = vmatprep.subr.bf16.mxu0 %v4615_v4  ;;  %4334 = vmatprep.subr.bf16.mxu1 %v4615_v4 }
 0x457   : > { %4033 = vmatprep.mubr.msk.f32.mxu0 %vm4616_vm1, %v4617_v12  ;;  %4044 = vmatprep.mubr.msk.f32.mxu1 %vm4616_vm1, %v4617_v12 }
 0x459   : > { %4330 = vmatpush3.bf16.msra.mxu0 %v4798_v26  ;;  %4336 = vmatpush3.bf16.msra.mxu1 %v4801_v27 }
 0x45a   : > { %4337 = vmatprep.subr.bf16.mxu0 %v4615_v4  ;;  %4343 = vmatprep.subr.bf16.mxu1 %v4615_v4 }
 0x45c   : > { %4034 = vmatmul.mubr.msk.f32.vlgmr.msra.gmra.mrb[18].mxu0 %vm431_vm2, %v1745_v50  ;;  %4045 = vmatmul.mubr.msk.f32.vlgmr.msra.gmra.mrb[18].mxu1 %vm431_vm2, %v1745_v50 }
 0x45d   : > { %4339 = vmatpush3.bf16.msra.mxu0 %v4732_v5  ;;  %4345 = vmatpush3.bf16.msra.mxu1 %v4743_v9 }
 0x45e   : > { %4340 = vmatprep.subr.bf16.mxu0 %v4615_v4  ;;  %4346 = vmatprep.subr.bf16.mxu1 %v4615_v4 }
 0x45f   : > { %4055 = vmatprep.mubr.msk.f32.mxu0 %vm4616_vm1, %v4617_v12  ;;  %4066 = vmatprep.mubr.msk.f32.mxu1 %vm4616_vm1, %v4617_v12 }
 0x461   : > { %4342 = vmatpush3.bf16.msra.mxu0 %v4756_v13  ;;  %4348 = vmatpush3.bf16.msra.mxu1 %v4760_v14 }
 0x462   : > { %4349 = vmatprep.subr.bf16.mxu0 %v4615_v4  ;;  %4355 = vmatprep.subr.bf16.mxu1 %v4615_v4 }
 0x527   : > { %v1818_v53 = vpop.f32.mrb[16].mxu0  ;;  %v1900_v54 = vpop.f32.mrb[16].mxu1 }
 0x528   : > { %v1822_v55 = vadd.f32 %v3598_v51, %v1818_v53  ;;  %v1904_v56 = vadd.f32 %v3600_v52, %v1900_v54  ;;  %v4013_v57 = vpop.f32.mrb[17].mxu0  ;;  %v4024_v58 = vpop.f32.mrb[17].mxu1 }
 0x52a   : > { %v1823_v59 = vand.u32 2147483647, %v1822_v55  ;;  %v1905_v60 = vand.u32 2147483647, %v1904_v56  ;;  %vm1827_vm0 = vcmp.ge.f32.partialorder %v1822_v55, 0.0  ;;  %vm1909_vm3 = vcmp.ge.f32.partialorder %v1904_v56, 0.0 }
 0x52b   : > { %v3612_v55 = vld [vmem:[%s4707_s26 + $0x2e] sm:$0x3] }
 0x52c   : > { %v1824_v61 = vsub.f32 0.0, %v1823_v59  ;;  %v1906_v62 = vsub.f32 0.0, %v1905_v60 }
 0x52e   : > { %v1825_v0 = vmul.f32 1.442695, %v1824_v61  ;;  %v1907_v1 = vmul.f32 1.442695, %v1906_v62 }
 0x52f   : > { %v1982_v2 = vpop.f32.mrb[18].mxu0  ;;  %v2056_v3 = vpop.f32.mrb[18].mxu1 }
 0x530   : > { %4522 = vpow2.f32 %v1825_v0  ;;  %v2060_v6 = vadd.f32 %v3604_v63, %v2056_v3  ;;  %v4035_v7 = vpop.f32.mrb[19].mxu0  ;;  %v4046_v8 = vpop.f32.mrb[19].mxu1  ;;  %v1986_v22 = vadd.f32 %v3602_v16, %v1982_v2  ;;  %v3610_v2 = vld [vmem:[%s4707_s26 + $0x2c] sm:$0x3] }
 0x531   : > { %4524 = vpow2.f32 %v1907_v1 }
 0x532   : > { %v2061_v10 = vand.u32 2147483647, %v2060_v6  ;;  %vm2065_vm4 = vcmp.ge.f32.partialorder %v2060_v6, 0.0 }
 0x534   : > { %v2062_v11 = vsub.f32 0.0, %v2061_v10 }
 0x536   : > { %v2063_v15 = vmul.f32 1.442695, %v2062_v11 }
 0x538   : > { %4526 = vpow2.f32 %v2063_v15 }
 0x53a   : > { %v4523_v17 = vpop.eup %4522 }
 0x53b   : > { %v4525_v18 = vpop.eup %4524  ;;  %v1829_v19 = vadd.f32 1.0, %v4523_v17  ;;  %v1828_v28 = vsel %vm1827_vm0, 1.0, %v4523_v17 }
 0x53c   : > { %v1911_v23 = vadd.f32 1.0, %v4525_v18  ;;  %v1910_v32 = vsel %vm1909_vm3, 1.0, %v4525_v18 }
 0x53d   : > { %4528 = vrcp.f32 %v1829_v19 }
 0x53e   : > { %4530 = vrcp.f32 %v1911_v23 }
 0x53f   : > { %4532 = vtanh.f32 %v1986_v22 }
 0x542   : > { %v4527_v24 = vpop.eup %4526 }
 0x543   : > { %v2067_v29 = vadd.f32 1.0, %v4527_v24  ;;  %v2066_v39 = vsel %vm2065_vm4, 1.0, %v4527_v24 }
 0x545   : > { %4534 = vrcp.f32 %v2067_v29 }
 0x547   : > { %v4529_v25 = vpop.eup %4528 }
 0x548   : > { %v4531_v30 = vpop.eup %4530  ;;  %v1831_v31 = vmul.f32 %v4529_v25, %v1828_v28 }
 0x549   : > { %v4533_v33 = vpop.eup %4532  ;;  %v1913_v34 = vmul.f32 %v4531_v30, %v1910_v32 }
 0x54a   : > { %v2071_v35 = vmul.f32 %v4533_v33, %v1831_v31 }
 0x54b   : > { %v2070_v36 = vmul.f32 %v1913_v34, %v4942_v45 }
 0x54d   : > { %v4979_v37 = vadd.f32 %v2071_v35, %v2070_v36 }
 0x54f   : > { %4536 = vtanh.f32 %v4979_v37  ;;  %v4535_v38 = vpop.eup %4534 }
 0x550   : > { %v2069_v40 = vmul.f32 %v4535_v38, %v2066_v39 }
 0x559   : > { %v4537_v41 = vpop.eup %4536 }
 0x55a   : > { %v2074_v42 = vmul.f32 %v4537_v41, %v2069_v40 }
 0x55c   : > { %2075 = vst.msk [vmem:[#allocation4 + $0x8] sm:$0x3] %vm758_vm6, %v2074_v42  ;;  %4056 = vmatmul.mubr.msk.f32.vlgmr.msra.gmra.mrb[20].mxu0 %vm431_vm2, %v2074_v42  ;;  %4067 = vmatmul.mubr.msk.f32.vlgmr.msra.gmra.mrb[20].mxu1 %vm431_vm2, %v2074_v42 }
 0x55d   : > { %4351 = vmatpush3.bf16.msra.mxu0 %v4776_v20  ;;  %4357 = vmatpush3.bf16.msra.mxu1 %v4779_v21 }
 0x55e   : > { %4352 = vmatprep.subr.bf16.mxu0 %v4615_v4  ;;  %4358 = vmatprep.subr.bf16.mxu1 %v4615_v4 }
 0x55f   : > { %4077 = vmatprep.mubr.msk.f32.mxu0 %vm4616_vm1, %v4617_v12  ;;  %4088 = vmatprep.mubr.msk.f32.mxu1 %vm4616_vm1, %v4617_v12 }
 0x561   : > { %4354 = vmatpush3.bf16.msra.mxu0 %v4798_v26  ;;  %4360 = vmatpush3.bf16.msra.mxu1 %v4801_v27 }
 0x562   : > { %4361 = vmatprep.subr.bf16.mxu0 %v4615_v4  ;;  %4367 = vmatprep.subr.bf16.mxu1 %v4615_v4 }
 0x564   : > { %4078 = vmatmul.mubr.msk.f32.vlgmr.msra.gmra.mrb[22].mxu0 %vm431_vm2, %v2074_v42  ;;  %4089 = vmatmul.mubr.msk.f32.vlgmr.msra.gmra.mrb[22].mxu1 %vm431_vm2, %v2074_v42 }
 0x565   : > { %4363 = vmatpush3.bf16.msra.mxu0 %v4732_v5  ;;  %4369 = vmatpush3.bf16.msra.mxu1 %v4743_v9 }
 0x566   : > { %4364 = vmatprep.subr.bf16.mxu0 %v4615_v4  ;;  %4370 = vmatprep.subr.bf16.mxu1 %v4615_v4 }
 0x567   : > { %4099 = vmatprep.mubr.msk.f32.mxu0 %vm4616_vm1, %v4617_v12  ;;  %4110 = vmatprep.mubr.msk.f32.mxu1 %vm4616_vm1, %v4617_v12 }
 0x569   : > { %4366 = vmatpush3.bf16.msra.mxu0 %v4756_v13  ;;  %4372 = vmatpush3.bf16.msra.mxu1 %v4760_v14 }
 0x56a   : > { %4373 = vmatprep.subr.bf16.mxu0 %v4615_v4  ;;  %4379 = vmatprep.subr.bf16.mxu1 %v4615_v4 }
 0x62f   : > { %v2147_v45 = vpop.f32.mrb[20].mxu0  ;;  %v2229_v46 = vpop.f32.mrb[20].mxu1 }
 0x630   : > { %v2151_v47 = vadd.f32 %v3606_v43, %v2147_v45  ;;  %v2233_v48 = vadd.f32 %v3608_v44, %v2229_v46  ;;  %v4057_v49 = vpop.f32.mrb[21].mxu0  ;;  %v4068_v50 = vpop.f32.mrb[21].mxu1  ;;  %v3620_v44 = vld [vmem:[%s4707_s26 + $0x36] sm:$0x3] }
 0x632   : > { %v2152_v51 = vand.u32 2147483647, %v2151_v47  ;;  %v2234_v52 = vand.u32 2147483647, %v2233_v48  ;;  %vm2156_vm5 = vcmp.ge.f32.partialorder %v2151_v47, 0.0  ;;  %vm2238_vm7 = vcmp.ge.f32.partialorder %v2233_v48, 0.0 }
 0x634   : > { %v2153_v53 = vsub.f32 0.0, %v2152_v51  ;;  %v2235_v54 = vsub.f32 0.0, %v2234_v52 }
 0x636   : > { %v2154_v56 = vmul.f32 1.442695, %v2153_v53  ;;  %v2236_v57 = vmul.f32 1.442695, %v2235_v54  ;;  %v3618_v54 = vld [vmem:[%s4707_s26 + $0x34] sm:$0x3] }
 0x637   : > { %v2311_v58 = vpop.f32.mrb[22].mxu0  ;;  %v2385_v59 = vpop.f32.mrb[22].mxu1 }
 0x638   : > { %4538 = vpow2.f32 %v2154_v56  ;;  %v2389_v60 = vadd.f32 %v3612_v55, %v2385_v59  ;;  %v4079_v61 = vpop.f32.mrb[23].mxu0  ;;  %v4090_v62 = vpop.f32.mrb[23].mxu1  ;;  %v2315_v8 = vadd.f32 %v3610_v2, %v2311_v58 }
 0x639   : > { %4540 = vpow2.f32 %v2236_v57 }
 0x63a   : > { %v2390_v63 = vand.u32 2147483647, %v2389_v60  ;;  %vm2394_vm8 = vcmp.ge.f32.partialorder %v2389_v60, 0.0 }
 0x63c   : > { %v2391_v0 = vsub.f32 0.0, %v2390_v63 }
 0x63e   : > { %v2392_v1 = vmul.f32 1.442695, %v2391_v0 }
 0x640   : > { %4542 = vpow2.f32 %v2392_v1 }
 0x642   : > { %v4539_v3 = vpop.eup %4538 }
 0x643   : > { %v4541_v6 = vpop.eup %4540  ;;  %v2158_v7 = vadd.f32 1.0, %v4539_v3  ;;  %v2157_v16 = vsel %vm2156_vm5, 1.0, %v4539_v3 }
 0x644   : > { %v2240_v10 = vadd.f32 1.0, %v4541_v6  ;;  %v2239_v22 = vsel %vm2238_vm7, 1.0, %v4541_v6 }
 0x645   : > { %4544 = vrcp.f32 %v2158_v7 }
 0x646   : > { %4546 = vrcp.f32 %v2240_v10 }
 0x647   : > { %4548 = vtanh.f32 %v2315_v8 }
 0x64a   : > { %v4543_v11 = vpop.eup %4542 }
 0x64b   : > { %v2396_v17 = vadd.f32 1.0, %v4543_v11  ;;  %v2395_v31 = vsel %vm2394_vm8, 1.0, %v4543_v11 }
 0x64d   : > { %4550 = vrcp.f32 %v2396_v17 }
 0x64f   : > { %v4545_v15 = vpop.eup %4544 }
 0x650   : > { %v4547_v18 = vpop.eup %4546  ;;  %v2160_v19 = vmul.f32 %v4545_v15, %v2157_v16 }
 0x651   : > { %v4549_v23 = vpop.eup %4548  ;;  %v2242_v24 = vmul.f32 %v4547_v18, %v2239_v22  ;;  %v3071_v22 = vld [vmem:[%s5140_s3 + $0x10] sm:$0xff] }
 0x652   : > { %v2400_v25 = vmul.f32 %v4549_v23, %v2160_v19  ;;  %v3073_v19 = vld [vmem:[%s5141_s4] sm:$0xf]  ;;  %v3072_v23 = vld [vmem:[%s5140_s3 + $0x18] sm:$0xff] }
 0x653   : > { %v2399_v28 = vmul.f32 %v2242_v24, %v4979_v37  ;;  %v4413_v24 = vpack.c.bf16 %v3072_v23, %v3071_v22  ;;  %v3356_v23 = vld [vmem:[%s5145_s8] sm:$0xff] }
 0x655   : > { %v5016_v29 = vadd.f32 %v2400_v25, %v2399_v28  ;;  %v3622_v25 = vld [vmem:[%s4707_s26 + $0x38] sm:$0x3]  ;;  %v3624_v28 = vld [vmem:[%s4707_s26 + $0x3a] sm:$0x3] }
 0x657   : > { %4552 = vtanh.f32 %v5016_v29  ;;  %v4551_v30 = vpop.eup %4550 }
 0x658   : > { %v2398_v32 = vmul.f32 %v4551_v30, %v2395_v31 }
 0x661   : > { %v4553_v33 = vpop.eup %4552 }
 0x662   : > { %v2403_v34 = vmul.f32 %v4553_v33, %v2398_v32 }
 0x664   : > { %2404 = vst.msk [vmem:[#allocation4 + $0xa] sm:$0x3] %vm758_vm6, %v2403_v34  ;;  %4100 = vmatmul.mubr.msk.f32.vlgmr.msra.gmra.mrb[24].mxu0 %vm431_vm2, %v2403_v34  ;;  %4111 = vmatmul.mubr.msk.f32.vlgmr.msra.gmra.mrb[24].mxu1 %vm431_vm2, %v2403_v34 }
 0x665   : > { %4375 = vmatpush3.bf16.msra.mxu0 %v4776_v20  ;;  %4381 = vmatpush3.bf16.msra.mxu1 %v4779_v21 }
 0x666   : > { %4376 = vmatprep.subr.bf16.mxu0 %v4615_v4  ;;  %4382 = vmatprep.subr.bf16.mxu1 %v4615_v4 }
 0x667   : > { %4121 = vmatprep.mubr.msk.f32.mxu0 %vm4616_vm1, %v4617_v12  ;;  %4132 = vmatprep.mubr.msk.f32.mxu1 %vm4616_vm1, %v4617_v12 }
 0x669   : > { %4378 = vmatpush3.bf16.msra.mxu0 %v4798_v26  ;;  %4384 = vmatpush3.bf16.msra.mxu1 %v4801_v27 }
 0x66a   : > { %4385 = vmatprep.subr.bf16.mxu0 %v4615_v4  ;;  %4391 = vmatprep.subr.bf16.mxu1 %v4615_v4 }
 0x66c   : > { %4122 = vmatmul.mubr.msk.f32.vlgmr.msra.gmra.mrb[26].mxu0 %vm431_vm2, %v2403_v34  ;;  %4133 = vmatmul.mubr.msk.f32.vlgmr.msra.gmra.mrb[26].mxu1 %vm431_vm2, %v2403_v34 }
 0x66d   : > { %4387 = vmatpush3.bf16.msra.mxu0 %v4732_v5  ;;  %4393 = vmatpush3.bf16.msra.mxu1 %v4743_v9  ;;  %v3614_v5 = vld [vmem:[%s4707_s26 + $0x30] sm:$0x3]  ;;  %v3616_v9 = vld [vmem:[%s4707_s26 + $0x32] sm:$0x3] }
 0x66e   : > { %4388 = vmatprep.subr.bf16.mxu0 %v4615_v4  ;;  %4394 = vmatprep.subr.bf16.mxu1 %v4615_v4 }
 0x66f   : > { %4143 = vmatprep.mubr.msk.f32.mxu0 %vm4616_vm1, %v4617_v12  ;;  %4154 = vmatprep.mubr.msk.f32.mxu1 %vm4616_vm1, %v4617_v12 }
 0x671   : > { %4390 = vmatpush3.bf16.msra.mxu0 %v4756_v13  ;;  %4396 = vmatpush3.bf16.msra.mxu1 %v4760_v14 }
 0x672   : > { %4397 = vmatprep.subr.bf16.mxu0 %v4615_v4  ;;  %4403 = vmatprep.subr.bf16.mxu1 %v4615_v4 }
 0x737   : > { %v2476_v35 = vpop.f32.mrb[24].mxu0  ;;  %v2558_v36 = vpop.f32.mrb[24].mxu1 }
 0x738   : > { %v2480_v37 = vadd.f32 %v3614_v5, %v2476_v35  ;;  %v2562_v38 = vadd.f32 %v3616_v9, %v2558_v36  ;;  %v4101_v39 = vpop.f32.mrb[25].mxu0  ;;  %v4112_v40 = vpop.f32.mrb[25].mxu1 }
 0x73a   : > { %v2481_v41 = vand.u32 2147483647, %v2480_v37  ;;  %v2563_v42 = vand.u32 2147483647, %v2562_v38  ;;  %vm2485_vm9 = vcmp.ge.f32.partialorder %v2480_v37, 0.0  ;;  %vm2567_vm10 = vcmp.ge.f32.partialorder %v2562_v38, 0.0 }
 0x73b   : > { %v3628_v37 = vld [vmem:[%s4707_s26 + $0x3e] sm:$0x3] }
 0x73c   : > { %v2482_v43 = vsub.f32 0.0, %v2481_v41  ;;  %v2564_v13 = vsub.f32 0.0, %v2563_v42 }
 0x73e   : > { %v2483_v45 = vmul.f32 1.442695, %v2482_v43  ;;  %v2565_v14 = vmul.f32 1.442695, %v2564_v13 }
 0x73f   : > { %v2640_v46 = vpop.f32.mrb[26].mxu0  ;;  %v2714_v47 = vpop.f32.mrb[26].mxu1 }
 0x740   : > { %4554 = vpow2.f32 %v2483_v45  ;;  %v2718_v48 = vadd.f32 %v3620_v44, %v2714_v47  ;;  %v4123_v49 = vpop.f32.mrb[27].mxu0  ;;  %v4134_v50 = vpop.f32.mrb[27].mxu1  ;;  %v2644_v58 = vadd.f32 %v3618_v54, %v2640_v46  ;;  %v3626_v46 = vld [vmem:[%s4707_s26 + $0x3c] sm:$0x3] }
 0x741   : > { %4556 = vpow2.f32 %v2565_v14 }
 0x742   : > { %v2719_v51 = vand.u32 2147483647, %v2718_v48  ;;  %vm2723_vm11 = vcmp.ge.f32.partialorder %v2718_v48, 0.0 }
 0x744   : > { %v2720_v52 = vsub.f32 0.0, %v2719_v51 }
 0x746   : > { %v2721_v53 = vmul.f32 1.442695, %v2720_v52 }
 0x748   : > { %4558 = vpow2.f32 %v2721_v53 }
 0x74a   : > { %v4555_v55 = vpop.eup %4554 }
 0x74b   : > { %v4557_v56 = vpop.eup %4556  ;;  %v2487_v57 = vadd.f32 1.0, %v4555_v55  ;;  %v2486_v62 = vsel %vm2485_vm9, 1.0, %v4555_v55 }
 0x74c   : > { %v2569_v59 = vadd.f32 1.0, %v4557_v56  ;;  %v2568_v2 = vsel %vm2567_vm10, 1.0, %v4557_v56 }
 0x74d   : > { %4560 = vrcp.f32 %v2487_v57 }
 0x74e   : > { %4562 = vrcp.f32 %v2569_v59 }
 0x74f   : > { %4564 = vtanh.f32 %v2644_v58 }
 0x752   : > { %v4559_v60 = vpop.eup %4558 }
 0x753   : > { %v2725_v63 = vadd.f32 1.0, %v4559_v60  ;;  %v2724_v15 = vsel %vm2723_vm11, 1.0, %v4559_v60 }
 0x755   : > { %4566 = vrcp.f32 %v2725_v63 }
 0x757   : > { %v4561_v61 = vpop.eup %4560 }
 0x758   : > { %v4563_v0 = vpop.eup %4562  ;;  %v2489_v1 = vmul.f32 %v4561_v61, %v2486_v62 }
 0x759   : > { %v4565_v3 = vpop.eup %4564  ;;  %v2571_v6 = vmul.f32 %v4563_v0, %v2568_v2 }
 0x75a   : > { %v2729_v7 = vmul.f32 %v4565_v3, %v2489_v1 }
 0x75b   : > { %v2728_v8 = vmul.f32 %v2571_v6, %v5016_v29 }
 0x75d   : > { %v5053_v10 = vadd.f32 %v2729_v7, %v2728_v8  ;;  %v3256_v8 = vld [vmem:[%s5143_s6] sm:$0xff] }
 0x75f   : > { %4568 = vtanh.f32 %v5053_v10  ;;  %v4567_v11 = vpop.eup %4566 }
 0x760   : > { %v2727_v16 = vmul.f32 %v4567_v11, %v2724_v15  ;;  %v3258_v15 = vld [vmem:[%s5143_s6 + $0x10] sm:$0xff] }
 0x769   : > { %v4569_v17 = vpop.eup %4568 }
 0x76a   : > { %v2732_v18 = vmul.f32 %v4569_v17, %v2727_v16  ;;  %v3259_v16 = vld [vmem:[%s5143_s6 + $0x18] sm:$0xff] }
 0x76b   : > { %v4421_v17 = vpack.c.bf16 %v3259_v16, %v3258_v15 }
 0x76c   : > { %2733 = vst.msk [vmem:[#allocation4 + $0xc] sm:$0x3] %vm758_vm6, %v2732_v18  ;;  %4144 = vmatmul.mubr.msk.f32.vlgmr.msra.gmra.mrb[28].mxu0 %vm431_vm2, %v2732_v18  ;;  %4155 = vmatmul.mubr.msk.f32.vlgmr.msra.gmra.mrb[28].mxu1 %vm431_vm2, %v2732_v18 }
 0x76d   : > { %4399 = vmatpush3.bf16.msra.mxu0 %v4776_v20  ;;  %4405 = vmatpush3.bf16.msra.mxu1 %v4779_v21  ;;  %v3067_v20 = vld [vmem:[%s4712_s30] sm:$0xff] }
 0x76e   : > { %4400 = vmatprep.subr.bf16.mxu0 %v4615_v4  ;;  %4406 = vmatprep.subr.bf16.mxu1 %v4615_v4  ;;  %v3068_v4 = vld [vmem:[%s4712_s30 + $0x8] sm:$0xff]  ;;  %v3069_v21 = vld [vmem:[%s5140_s3] sm:$0xff] }
 0x76f   : > { %4165 = vmatprep.mubr.msk.f32.mxu0 %vm4616_vm1, %v4617_v12  ;;  %4176 = vmatprep.mubr.msk.f32.mxu1 %vm4616_vm1, %v4617_v12  ;;  %v3065_v12 = vld [vmem:[#allocation4] sm:$0xff] }
 0x771   : > { %4402 = vmatpush3.bf16.msra.mxu0 %v4798_v26  ;;  %4408 = vmatpush3.bf16.msra.mxu1 %v4801_v27  ;;  %v3070_v26 = vld [vmem:[%s5140_s3 + $0x8] sm:$0xff] }
 0x772   : > { %4179 = vmatprep.subr.msk.mxu0 %vm3081_vm12, %v3073_v19  ;;  %v4409_v27 = vpack.c.bf16 %v3070_v26, %v3069_v21 }
 0x774   : > { %4166 = vmatmul.mubr.msk.f32.vlgmr.msra.gmra.mrb[30].mxu0 %vm431_vm2, %v2732_v18  ;;  %4177 = vmatmul.mubr.msk.f32.vlgmr.msra.gmra.mrb[30].mxu1 %vm431_vm2, %v2732_v18  ;;  %v3635_v18 = vld [vmem:[%s5142_s5] ss:$0 sm:$0xff] }
 0x775   : > { %4180 = vmatpush3.msk.msra.mxu0 %vm3081_vm12, %v3073_v19  ;;  %4181 = vmatprep.mubr.msk.f32.mxu0 %vm3074_vm13, %v3067_v20 }
 0x776   : > { %4410 = vmatprep.subr.bf16.mxu0 %v4409_v27 }
 0x778   : > { %4182 = vmatmul.mubr.msk.f32.vlgmr.msra.gmra.mrb[32].mxu0 %vm3074_vm13, %v3068_v4 }
 0x779   : > { %4192 = vmatprep.mubr.msk.f32.mxu0 %vm431_vm2, %v3065_v12  ;;  %4412 = vmatpush3.bf16.msra.mxu0 %v4409_v27 }
 0x77a   : > { %4414 = vmatprep.subr.bf16.mxu0 %v4413_v24 }
 0x77d   : > { %4416 = vmatpush3.bf16.msra.mxu0 %v4413_v24  ;;  %v3357_v24 = vld [vmem:[%s5145_s8 + $0x8] sm:$0xff] }
 0x83f   : > { %v2805_v29 = vpop.f32.mrb[28].mxu0  ;;  %v2887_v30 = vpop.f32.mrb[28].mxu1 }
 0x840   : > { %v2809_v31 = vadd.f32 %v3622_v25, %v2805_v29  ;;  %v2891_v32 = vadd.f32 %v3624_v28, %v2887_v30  ;;  %v4145_v33 = vpop.f32.mrb[29].mxu0  ;;  %v4156_v34 = vpop.f32.mrb[29].mxu1  ;;  %v4425_v25 = vpack.c.bf16 %v3357_v24, %v3356_v23  ;;  %v3358_v28 = vld [vmem:[%s5145_s8 + $0x10] sm:$0xff]  ;;  %v3359_v29 = vld [vmem:[%s5145_s8 + $0x18] sm:$0xff] }
 0x841   : > { %v4429_v30 = vpack.c.bf16 %v3359_v29, %v3358_v28 }
 0x842   : > { %v2810_v5 = vand.u32 2147483647, %v2809_v31  ;;  %v2892_v9 = vand.u32 2147483647, %v2891_v32  ;;  %vm2814_vm1 = vcmp.ge.f32.partialorder %v2809_v31, 0.0  ;;  %vm2896_vm14 = vcmp.ge.f32.partialorder %v2891_v32, 0.0 }
 0x843   : > { %v3636_v31 = vld [vmem:[%s5144_s7] ss:$0 sm:$0xff] }
 0x844   : > { %v2811_v35 = vsub.f32 0.0, %v2810_v5  ;;  %v2893_v36 = vsub.f32 0.0, %v2892_v9 }
 0x846   : > { %v2812_v38 = vmul.f32 1.442695, %v2811_v35  ;;  %v2894_v39 = vmul.f32 1.442695, %v2893_v36 }
 0x847   : > { %v2969_v40 = vpop.f32.mrb[30].mxu0  ;;  %v3043_v41 = vpop.f32.mrb[30].mxu1 }
 0x848   : > { %4570 = vpow2.f32 %v2812_v38  ;;  %v3047_v42 = vadd.f32 %v3628_v37, %v3043_v41  ;;  %v4167_v43 = vpop.f32.mrb[31].mxu0  ;;  %v4178_v13 = vpop.f32.mrb[31].mxu1  ;;  %v2973_v50 = vadd.f32 %v3626_v46, %v2969_v40  ;;  %v3361_v40 = vstv %s3360_s25 }
 0x849   : > { %4572 = vpow2.f32 %v2894_v39 }
 0x84a   : > { %v3048_v44 = vand.u32 2147483647, %v3047_v42  ;;  %vm3052_vm15 = vcmp.ge.f32.partialorder %v3047_v42, 0.0 }
 0x84c   : > { %v3049_v45 = vsub.f32 0.0, %v3048_v44 }
 0x84e   : > { %v3050_v14 = vmul.f32 1.442695, %v3049_v45  ;;  %v3450_v45 = vstv %s3641_s27 }
 0x850   : > { %4574 = vpow2.f32 %v3050_v14 }
 0x852   : > { %v4571_v47 = vpop.eup %4570 }
 0x853   : > { %v4573_v48 = vpop.eup %4572  ;;  %v2816_v49 = vadd.f32 1.0, %v4571_v47  ;;  %v2815_v54 = vsel %vm2814_vm1, 1.0, %v4571_v47 }
 0x854   : > { %v2898_v51 = vadd.f32 1.0, %v4573_v48  ;;  %v2897_v58 = vsel %vm2896_vm14, 1.0, %v4573_v48  ;;  %v3454_v48 = vstv %s3642_s28 }
 0x855   : > { %4576 = vrcp.f32 %v2816_v49 }
 0x856   : > { %4578 = vrcp.f32 %v2898_v51 }
 0x857   : > { %4580 = vtanh.f32 %v2973_v50 }
 0x85a   : > { %v4575_v52 = vpop.eup %4574 }
 0x85b   : > { %v3054_v55 = vadd.f32 1.0, %v4575_v52  ;;  %v3053_v1 = vsel %vm3052_vm15, 1.0, %v4575_v52 }
 0x85d   : > { %4582 = vrcp.f32 %v3054_v55 }
 0x85f   : > { %v4577_v53 = vpop.eup %4576 }
 0x860   : > { %v4579_v56 = vpop.eup %4578  ;;  %v2818_v57 = vmul.f32 %v4577_v53, %v2815_v54 }
 0x861   : > { %v4581_v59 = vpop.eup %4580  ;;  %v2900_v60 = vmul.f32 %v4579_v56, %v2897_v58 }
 0x862   : > { %v3058_v61 = vmul.f32 %v4581_v59, %v2818_v57 }
 0x863   : > { %v3057_v62 = vmul.f32 %v2900_v60, %v5053_v10  ;;  %v3257_v10 = vld [vmem:[%s5143_s6 + $0x8] sm:$0xff] }
 0x864   : > { %v4417_v11 = vpack.c.bf16 %v3257_v10, %v3256_v8 }
 0x865   : > { %v3059_v63 = vadd.f32 %v3058_v61, %v3057_v62 }
 0x866   : > { %4418 = vmatprep.subr.bf16.mxu1 %v4417_v11 }
 0x867   : > { %4584 = vtanh.f32 %v3059_v63  ;;  %3064 = vst.msk [vmem:[#allocation3] sm:$0x3] %vm758_vm6, %v3059_v63  ;;  %v4583_v0 = vpop.eup %4582  ;;  %4420 = vmatpush3.bf16.msra.mxu1 %v4417_v11 }
 0x868   : > { %v3056_v2 = vmul.f32 %v4583_v0, %v3053_v1  ;;  %4422 = vmatprep.subr.bf16.mxu1 %v4421_v17 }
 0x86b   : > { %4424 = vmatpush3.bf16.msra.mxu1 %v4421_v17 }
 0x86c   : > { %4426 = vmatprep.subr.bf16.mxu1 %v4425_v25 }
 0x871   : > { %v4585_v3 = vpop.eup %4584 }
 0x872   : > { %v3061_v6 = vmul.f32 %v4585_v3, %v3056_v2 }
 0x874   : > { %3062 = vst.msk [vmem:[#allocation4 + $0xe] sm:$0x3] %vm758_vm6, %v3061_v6  ;;  %3063 = vst.msk [vmem:[#allocation2] sm:$0x3] %vm758_vm6, %v3061_v6 }
 0x87b   : > { %v3066_v7 = vld [vmem:[#allocation4 + $0x8] sm:$0xff] }
 0x87c   : > { %4193 = vmatmul.mubr.msk.f32.vlgmr.msra.gmra.mrb[32].mxu0 %vm431_vm2, %v3066_v7 }
 0x94f   : > { %v4194_v19 = vpop.f32.mrb[32].mxu0 }
 0x950   : > { %v3249_v20 = vadd.f32 %v4194_v19, %v3635_v18  ;;  %v3232_v4 = vpop.f32.mrb[33].mxu0 }
 0x951   : > { %v3248_v12 = vadd.f32 %v3635_v18, %v3232_v4 }
 0x952   : > { %v3253_v21 = vmul.f32 0.01, %v3249_v20  ;;  %vm3251_vm6 = vcmp.ge.f32.partialorder %v3249_v20, 0.0 }
 0x953   : > { %vm3250_vm0 = vcmp.ge.f32.partialorder %v3248_v12, 0.0  ;;  %v3252_v26 = vmul.f32 0.01, %v3248_v12 }
 0x954   : > { %v3255_v22 = vsel %vm3251_vm6, %v3249_v20, %v3253_v21 }
 0x955   : > { %v3254_v27 = vsel %vm3250_vm0, %v3248_v12, %v3252_v26 }
 0x956   : > { %4203 = vmatprep.mubr.msk.f32.mxu1 %vm431_vm2, %v3254_v27 }
 0x957   : > { %4204 = vmatmul.mubr.msk.f32.vlgmr.msra.gmra.mrb[32].mxu1 %vm431_vm2, %v3255_v22 }
 0x958   : > { %4428 = vmatpush3.bf16.msra.mxu1 %v4425_v25 }
 0x959   : > { %4430 = vmatprep.subr.bf16.mxu1 %v4429_v30 }
 0x95c   : > { %4432 = vmatpush3.bf16.msra.mxu1 %v4429_v30 }
 0xa2a   : > { %v4205_v32 = vpop.f32.mrb[32].mxu1 }
 0xa2b   : > { %v3345_v33 = vadd.f32 %v4205_v32, %v3636_v31  ;;  %v3339_v34 = vpop.f32.mrb[33].mxu1 }
 0xa2c   : > { %v3340_v5 = vadd.f32 %v3636_v31, %v3339_v34 }
 0xa2d   : > { %vm3349_vm3 = vcmp.ge.f32.partialorder %v3345_v33, 0.0  ;;  %v3351_v9 = vmul.f32 0.01, %v3345_v33 }
 0xa2e   : > { %vm3348_vm4 = vcmp.ge.f32.partialorder %v3340_v5, 0.0  ;;  %v3350_v35 = vmul.f32 0.01, %v3340_v5 }
 0xa2f   : > { %v3353_v36 = vsel %vm3349_vm3, %v3345_v33, %v3351_v9 }
 0xa30   : > { %v3352_v37 = vsel %vm3348_vm4, %v3340_v5, %v3350_v35  ;;  %v3355_v39 = vadd.f32 %v3353_v36, %v3255_v22 }
 0xa31   : > { %v3354_v38 = vadd.f32 %v3352_v37, %v3254_v27 }
 0xa33   : > { %4214 = vmatprep.mubr.msk.f32.mxu1 %vm431_vm2, %v3354_v38 }
 0xa34   : > { %4215 = vmatmul.mubr.msk.f32.vlgmr.msra.gmra.mrb[34].mxu1 %vm431_vm2, %v3355_v39  ;;  %vm3457_vm2 = vcmask 7168  }
 0xb07   : > { %v4216_v41 = vpop.f32.mrb[34].mxu1 }
 0xb08   : > { %v3440_v42 = vadd.f32 %v4216_v41, %v3361_v40  ;;  %v3434_v43 = vpop.f32.mrb[35].mxu1 }
 0xb09   : > { %v3435_v13 = vadd.f32 %v3434_v43, %v3361_v40 }
 0xb0a   : > { %vm3444_vm5 = vcmp.ge.f32.partialorder %v3440_v42, 0.0  ;;  %v3446_v44 = vmul.f32 0.01, %v3440_v42 }
 0xb0b   : > { %vm3443_vm7 = vcmp.ge.f32.partialorder %v3435_v13, 0.0  ;;  %v3445_v14 = vmul.f32 0.01, %v3435_v13 }
 0xb0c   : > { %v3448_v46 = vsel %vm3444_vm5, %v3440_v42, %v3446_v44 }
 0xb0d   : > { %v3452_v47 = vmul.f32 %v3450_v45, %v3448_v46  ;;  %v3447_v49 = vsel %vm3443_vm7, %v3435_v13, %v3445_v14 }
 0xb0e   : > { %v3451_v50 = vmul.f32 %v3450_v45, %v3447_v49 }
 0xb0f   : > { %v3456_v52 = vadd.f32 %v3454_v48, %v3452_v47 }
 0xb10   : > { %v3455_v51 = vadd.f32 %v3454_v48, %v3451_v50 }
 0xb11   : > { %3459 = vst.msk [vmem:[%s4717_s15 + $0x8] sm:$0xff] %vm3457_vm2, %v3456_v52 }
 0xb12   : > { %3458 = vst.msk [vmem:[%s4717_s15] sm:$0xff] %vm3457_vm2, %v3455_v51 }
 0xb13 PF: > { %s21_s13 = sadd.s32 1, %s4611_s13  }
 0xb14   : > { %p18_p3 = scmp.ge.s32.totalorder %s21_s13, 4  }
 0xb16   :  { %20 = sbr.rel (!%p18_p3) target bundleno = 1 (0x1), region = 136 }
 0xb1d   :  { %3482 = vsyncpa [#allocation6], 1 }
 0xb1e   :  { %3484 = vsyncpa [#allocation6 + $0x1], 1 }

</bundles_post_ra>
